<compile_context>
chip_gen: v7x
topology: tpu7x:2x2x1
jax: 0.10.0
libtpu: 0.0.40
codegen_flags: <defaults>
</compile_context>

<pallas_src>
import jax
import jax.numpy as jnp
from jax.experimental import pallas as pl
from jax.experimental.pallas import tpu as pltpu


def _round_up(x, m):
    return ((x + m - 1) // m) * m


# ---------------------------------------------------------------------------
# Fused STConv kernel: one grid step == one batch element, everything in VMEM.
# ---------------------------------------------------------------------------
def _stconv_fused_kernel(x_ref, a_ref, w1_ref, b1_ref, wg_ref, bg_ref,
                         w2_ref, b2_ref, o_ref):
    """Fused STConv forward for one batch element.

    x_ref : (T, N, Cin)    f32   input slab for this batch element
    a_ref : (N, N)         bf16  normalized adjacency (resident across steps)
    w1_ref: (K*Cin, 3*Hp)  bf16  tconv1 fused gate weights [P|Q|R], taps folded
    b1_ref: (1, 3*Hp)      f32
    wg_ref: (Hp, Hp)       bf16  GCN weight, zero-padded to Hp lanes
    bg_ref: (1, Hp)        f32
    w2_ref: (K*Hp, 3*Cp)   bf16  tconv2 fused gate weights
    b2_ref: (1, 3*Cp)      f32
    o_ref : (T, N, Cout)   f32   output slab
    """
    T, N, Cin = x_ref.shape
    Cout = o_ref.shape[-1]
    Hp = w1_ref.shape[1] // 3
    K = w1_ref.shape[0] // Cin
    Cp = w2_ref.shape[1] // 3
    pad = (K - 1) // 2

    # ---- stage 1: gated temporal conv #1 ---------------------------------
    # Taps are folded into the MXU contraction: the LHS rows are the K shifted
    # time-slices concatenated along channels -> one matmul of depth K*Cin.
    # The time halo is handled in VMEM (no wrapper-side jnp.pad HBM pass).
    x = x_ref[...].astype(jnp.bfloat16)                        # (T, N, Cin)
    zc = jnp.zeros((pad, N, Cin), jnp.bfloat16)
    xp = jnp.concatenate([zc, x, zc], axis=0)                  # (T+K-1, N, Cin)
    lhs1 = jnp.concatenate([xp[k:k + T] for k in range(K)], axis=-1)
    lhs1 = lhs1.reshape(T * N, K * Cin)
    acc1 = jnp.dot(lhs1, w1_ref[...], preferred_element_type=jnp.float32)
    acc1 = acc1 + b1_ref[...]
    # Hp is a multiple of 128 -> gate slices land on lane-tile boundaries.
    t0 = jnp.maximum(acc1[:, :Hp] * jax.nn.sigmoid(acc1[:, Hp:2 * Hp])
                     + acc1[:, 2 * Hp:], 0.0)                  # (T*N, Hp) f32

    # ---- stage 2: GCN  relu(A_hat @ (T0 @ W) + b) ------------------------
    xw = jnp.dot(t0.astype(jnp.bfloat16), wg_ref[...],
                 preferred_element_type=jnp.float32)           # (T*N, Hp)
    xwb = xw.astype(jnp.bfloat16)
    a = a_ref[...]                                             # (N, N) bf16
    # One (N,N)x(N,Hp) matmul per time step (128-wide lane-dense output);
    # no broadcasted copies of A_hat are ever materialized.
    agg = jnp.concatenate(
        [jnp.dot(a, xwb[t * N:(t + 1) * N, :],
                 preferred_element_type=jnp.float32) for t in range(T)],
        axis=0)                                                # (T*N, Hp) f32
    tg = jnp.maximum(agg + bg_ref[...], 0.0)                   # relu, f32

    # ---- stage 3: gated temporal conv #2 ----------------------------------
    tgb = tg.astype(jnp.bfloat16).reshape(T, N, Hp)
    zh = jnp.zeros((pad, N, Hp), jnp.bfloat16)
    tgp = jnp.concatenate([zh, tgb, zh], axis=0)               # (T+K-1, N, Hp)
    lhs2 = jnp.concatenate([tgp[k:k + T] for k in range(K)], axis=-1)
    lhs2 = lhs2.reshape(T * N, K * Hp)
    acc2 = jnp.dot(lhs2, w2_ref[...], preferred_element_type=jnp.float32)
    acc2 = acc2 + b2_ref[...]
    h = jnp.maximum(acc2[:, :Cp] * jax.nn.sigmoid(acc2[:, Cp:2 * Cp])
                    + acc2[:, 2 * Cp:], 0.0)                   # (T*N, Cp) f32
    o_ref[...] = h[:, :Cout].reshape(T, N, Cout).astype(o_ref.dtype)


# ---------------------------------------------------------------------------
# Wrappers: weight fusion / lane padding / pallas_call plumbing
# ---------------------------------------------------------------------------
def _fuse_tconv_weights(W1, b1, W2, b2, W3, b3, cin_pad, cout_pad):
    """Fuse the three (K, Cin, Cout) gate convs into one (K*cin_pad, 3*cout_pad)
    bf16 MXU RHS and one (1, 3*cout_pad) f32 bias row.

    Zero-padding keeps the padded lanes exactly zero through the gate math
    (p=0, p*sigmoid(0)=0, r=0 -> relu(0)=0), so padded channels never leak.
    """
    K, Cin, Cout = W1.shape

    def pw(W):
        return jnp.pad(W, ((0, 0), (0, cin_pad - Cin), (0, cout_pad - Cout)))

    def pb(b):
        return jnp.pad(b, (0, cout_pad - Cout))

    Wf = jnp.concatenate([pw(W1), pw(W2), pw(W3)], axis=-1)     # (K, cin_pad, 3*cout_pad)
    Wf = Wf.reshape(K * cin_pad, 3 * cout_pad).astype(jnp.bfloat16)
    bf = jnp.concatenate([pb(b1), pb(b2), pb(b3)])[None].astype(jnp.float32)
    return Wf, bf


def stconv_forward(X, A_hat, params):
    """Full STConv forward: TemporalConv1 -> GCN(+relu) -> TemporalConv2.

    X: (B, T, N, Cin) f32, A_hat: (N, N).  Returns (B, T, N, Cout) f32.
    (The final .permute(0,2,1,3).permute(0,2,1,3) in the torch code is identity.)
    """
    B, T, N, Cin = X.shape
    W1, b1, W2, b2, W3, b3 = params["tc1"]
    Wg, bg = params["gcn"]
    V1, c1, V2, c2, V3, c3 = params["tc2"]
    K, _, Hid = W1.shape
    Cout = V1.shape[-1]
    assert K % 2 == 1, "only odd temporal kernel sizes are supported"
    # TODO(synk): for very large graphs where the per-batch slab (T*N*Hp
    # activations + A_hat + weights) no longer fits VMEM, node/time tiling of
    # the fused kernel would be required.

    Hp = _round_up(Hid, 128)     # lane-pad hidden: aligned gates, lane-dense T0/Tg
    Cp = _round_up(Cout, 128)    # lane-pad tconv2 gate width (extra MXU cols ~free)

    Wf1, bf1 = _fuse_tconv_weights(W1, b1, W2, b2, W3, b3, Cin, Hp)
    Wf2, bf2 = _fuse_tconv_weights(V1, c1, V2, c2, V3, c3, Hp, Cp)
    Wg_p = jnp.pad(Wg, ((0, Hp - Hid), (0, Hp - Hid))).astype(jnp.bfloat16)
    bg_p = jnp.pad(bg, (0, Hp - Hid))[None].astype(jnp.float32)
    A_b = A_hat.astype(jnp.bfloat16)
    X = X.astype(jnp.float32)

    flops = 2 * B * T * N * (K * Cin * 3 * Hp + Hp * Hp + N * Hp + K * Hp * 3 * Cp)
    transcendentals = B * T * N * (Hp + Cp)
    bytes_accessed = (X.size * 4 + B * T * N * Cout * 4
                      + 2 * (A_b.size + Wf1.size + Wg_p.size + Wf2.size)
                      + 4 * (bf1.size + bg_p.size + bf2.size))

    return pl.pallas_call(
        _stconv_fused_kernel,
        out_shape=jax.ShapeDtypeStruct((B, T, N, Cout), jnp.float32),
        grid_spec=pltpu.PrefetchScalarGridSpec(
            num_scalar_prefetch=0,
            grid=(B,),
            in_specs=[
                pl.BlockSpec((None, T, N, Cin), lambda b: (b, 0, 0, 0)),
                # constant index_maps -> operands stay resident in VMEM
                pl.BlockSpec((N, N), lambda b: (0, 0)),
                pl.BlockSpec((K * Cin, 3 * Hp), lambda b: (0, 0)),
                pl.BlockSpec((1, 3 * Hp), lambda b: (0, 0)),
                pl.BlockSpec((Hp, Hp), lambda b: (0, 0)),
                pl.BlockSpec((1, Hp), lambda b: (0, 0)),
                pl.BlockSpec((K * Hp, 3 * Cp), lambda b: (0, 0)),
                pl.BlockSpec((1, 3 * Cp), lambda b: (0, 0)),
            ],
            out_specs=pl.BlockSpec((None, T, N, Cout), lambda b: (b, 0, 0, 0)),
        ),
        compiler_params=pltpu.CompilerParams(
            dimension_semantics=("parallel",),
            vmem_limit_bytes=48 * 1024 * 1024),
        cost_estimate=pl.CostEstimate(
            flops=int(flops),
            transcendentals=int(transcendentals),
            bytes_accessed=int(bytes_accessed)),
    )(X, A_b, Wf1, bf1, Wg_p, bg_p, Wf2, bf2)


# ---------------------------------------------------------------------------
# Graph preprocessing & parameters
# ---------------------------------------------------------------------------
def build_norm_adj(edge_index, edge_weight, num_nodes):
    # TODO(synk): the repo's custom GCNConv(in_channels_node, in_channels_edge,
    # out_channels) source was not provided; implemented standard sym-normalized
    # GCN (A_hat X W + b) with edge weights; the edge-feature path is omitted.
    src, dst = edge_index[0], edge_index[1]
    A = jnp.zeros((num_nodes, num_nodes), jnp.float32).at[dst, src].add(edge_weight)
    A = A + jnp.eye(num_nodes, dtype=jnp.float32)               # self loops
    deg = A.sum(axis=1)
    dinv = jnp.where(deg > 0, 1.0 / jnp.sqrt(deg), 0.0)
    return dinv[:, None] * A * dinv[None, :]


def init_params(key, cin, hidden, cout, ksize):
    keys = jax.random.split(key, 14)

    def u(k, shape, fan_in):
        bound = 1.0 / (fan_in ** 0.5)
        return jax.random.uniform(k, shape, jnp.float32, -bound, bound)

    def tconv(ks6, cin_, cout_):
        fan = cin_ * ksize
        return (u(ks6[0], (ksize, cin_, cout_), fan), u(ks6[1], (cout_,), fan),
                u(ks6[2], (ksize, cin_, cout_), fan), u(ks6[3], (cout_,), fan),
                u(ks6[4], (ksize, cin_, cout_), fan), u(ks6[5], (cout_,), fan))

    tc1 = tconv(keys[0:6], cin, hidden)
    Wg = u(keys[6], (hidden, hidden), hidden)
    bg = u(keys[7], (hidden,), hidden)
    tc2 = tconv(keys[8:14], hidden, cout)
    return {"tc1": tc1, "gcn": (Wg, bg), "tc2": tc2}


# ---------------------------------------------------------------------------
# Pure-JAX reference (mirrors the module's math and the kernel's bf16 MXU
# input / f32 accumulation precision) for validation.
# ---------------------------------------------------------------------------
_HI = jax.lax.Precision.HIGHEST


def _r(x):
    """Round through bf16: mirrors the kernel's bf16 matmul inputs."""
    return x.astype(jnp.bfloat16).astype(jnp.float32)


def _ref_gated_tconv(X, W1, b1, W2, b2, W3, b3):
    K = W1.shape[0]
    pad = (K - 1) // 2
    T = X.shape[1]
    Xp = jnp.pad(_r(X), ((0, 0), (pad, pad), (0, 0), (0, 0)))

    def conv(W, b):
        acc = jnp.zeros(X.shape[:3] + (W.shape[-1],), jnp.float32) + b
        for k in range(K):
            acc = acc + jnp.einsum("btnc,co->btno", Xp[:, k:k + T], _r(W[k]),
                                   precision=_HI)
        return acc

    P = conv(W1, b1)
    Q = conv(W2, b2)
    R = conv(W3, b3)
    return jnp.maximum(P * jax.nn.sigmoid(Q) + R, 0.0)


def _ref_gcn(T0, A_hat, W, b):
    XW = jnp.einsum("btnh,hk->btnk", _r(T0), _r(W), precision=_HI)
    agg = jnp.einsum("ij,btjh->btih", _r(A_hat), _r(XW), precision=_HI)
    return jnp.maximum(agg + b, 0.0)


def stconv_reference(X, A_hat, params):
    T0 = _ref_gated_tconv(X, *params["tc1"])
    Tg = _ref_gcn(T0, A_hat, *params["gcn"])
    return _ref_gated_tconv(Tg, *params["tc2"])


# ---------------------------------------------------------------------------
if __name__ == "__main__":
    B, T, N = 2, 8, 16
    Cin, Hidden, Cout, Ksize = 4, 32, 8, 3

    key = jax.random.PRNGKey(0)
    kx, ke, kp = jax.random.split(key, 3)

    X = jax.random.normal(kx, (B, T, N, Cin), jnp.float32)

    # simple bidirectional ring graph on N nodes
    src = jnp.arange(N, dtype=jnp.int32)
    dst = (src + 1) % N
    edge_index = jnp.stack([jnp.concatenate([src, dst]),
                            jnp.concatenate([dst, src])])
    edge_weight = jax.random.uniform(ke, (2 * N,), jnp.float32, 0.5, 1.5)
    A_hat = build_norm_adj(edge_index, edge_weight, N)

    params = init_params(kp, Cin, Hidden, Cout, Ksize)

    fwd = jax.jit(stconv_forward)
    out = jax.block_until_ready(fwd(X, A_hat, params))

    ref = stconv_reference(X, A_hat, params)
    assert out.shape == (B, T, N, Cout), out.shape
    err = float(jnp.max(jnp.abs(out - ref)))
    assert jnp.allclose(out, ref, rtol=1e-2, atol=1e-2), f"max abs err {err}"
    print("KERNEL_OK")
</pallas_src>

<mosaic_0001>
module attributes {stable_mosaic.version = 11 : i64} {
  func.func @_stconv_fused_kernel(%arg0: i32, %arg1: memref<1x8x16x4xf32, #tpu.memory_space<vmem>>, %arg2: memref<16x16xbf16, #tpu.memory_space<vmem>>, %arg3: memref<12x384xbf16, #tpu.memory_space<vmem>>, %arg4: memref<1x384xf32, #tpu.memory_space<vmem>>, %arg5: memref<128x128xbf16, #tpu.memory_space<vmem>>, %arg6: memref<1x128xf32, #tpu.memory_space<vmem>>, %arg7: memref<384x384xbf16, #tpu.memory_space<vmem>>, %arg8: memref<1x384xf32, #tpu.memory_space<vmem>>, %arg9: memref<1x8x16x8xf32, #tpu.memory_space<vmem>>) attributes {dimension_semantics = [#tpu.dimension_semantics<parallel>], iteration_bounds = array<i64: 2>, scalar_prefetch = 0 : i64, scratch_operands = 0 : i64, tpu.core_type = #tpu.core_type<tc>, window_params = [{transform_indices = @transform_0, window_bounds = array<i64: 1, 8, 16, 4>}, {pipeline_mode = #tpu.pipeline_mode<synchronous>, transform_indices = @transform_1, window_bounds = array<i64: 16, 16>}, {pipeline_mode = #tpu.pipeline_mode<synchronous>, transform_indices = @transform_2, window_bounds = array<i64: 12, 384>}, {pipeline_mode = #tpu.pipeline_mode<synchronous>, transform_indices = @transform_3, window_bounds = array<i64: 1, 384>}, {pipeline_mode = #tpu.pipeline_mode<synchronous>, transform_indices = @transform_4, window_bounds = array<i64: 128, 128>}, {pipeline_mode = #tpu.pipeline_mode<synchronous>, transform_indices = @transform_5, window_bounds = array<i64: 1, 128>}, {pipeline_mode = #tpu.pipeline_mode<synchronous>, transform_indices = @transform_6, window_bounds = array<i64: 384, 384>}, {pipeline_mode = #tpu.pipeline_mode<synchronous>, transform_indices = @transform_7, window_bounds = array<i64: 1, 384>}, {transform_indices = @transform_8, window_bounds = array<i64: 1, 8, 16, 8>}]} {
    %c0 = arith.constant 0 : index
    %c0_0 = arith.constant 0 : index
    %c0_1 = arith.constant 0 : index
    %c0_2 = arith.constant 0 : index
    %0 = vector.load %arg1[%c0, %c0_0, %c0_1, %c0_2] : memref<1x8x16x4xf32, #tpu.memory_space<vmem>>, vector<1x8x16x4xf32>
    %1 = vector.shape_cast %0 : vector<1x8x16x4xf32> to vector<8x16x4xf32>
    %2 = arith.truncf %1 : vector<8x16x4xf32> to vector<8x16x4xbf16>
    %cst = arith.constant 0.000000e+00 : bf16
    %3 = vector.broadcast %cst : bf16 to vector<1x16x4xbf16>
    %4 = tpu.concatenate %3, %2, %3 in 0 : vector<1x16x4xbf16>, vector<8x16x4xbf16>, vector<1x16x4xbf16> -> vector<10x16x4xbf16>
    %5 = vector.extract_strided_slice %4 {offsets = [0, 0, 0], sizes = [8, 16, 4], strides = [1, 1, 1]} : vector<10x16x4xbf16> to vector<8x16x4xbf16>
    %6 = vector.extract_strided_slice %4 {offsets = [1, 0, 0], sizes = [8, 16, 4], strides = [1, 1, 1]} : vector<10x16x4xbf16> to vector<8x16x4xbf16>
    %7 = vector.extract_strided_slice %4 {offsets = [2, 0, 0], sizes = [8, 16, 4], strides = [1, 1, 1]} : vector<10x16x4xbf16> to vector<8x16x4xbf16>
    %8 = tpu.concatenate %5, %6, %7 in 2 : vector<8x16x4xbf16>, vector<8x16x4xbf16>, vector<8x16x4xbf16> -> vector<8x16x12xbf16>
    %9 = vector.shape_cast %8 : vector<8x16x12xbf16> to vector<128x12xbf16>
    %c0_3 = arith.constant 0 : index
    %c0_4 = arith.constant 0 : index
    %10 = vector.load %arg3[%c0_3, %c0_4] : memref<12x384xbf16, #tpu.memory_space<vmem>>, vector<12x384xbf16>
    %cst_5 = arith.constant dense<0.000000e+00> : vector<128x384xf32>
    %11 = tpu.matmul %9, %10, %cst_5 {dimension_numbers = #tpu.dot_dimension_numbers<[1], [0], [0], [1], [0, 0, 1, 1], [], []>} : vector<128x12xbf16>, vector<12x384xbf16>, vector<128x384xf32> -> vector<128x384xf32>
    %c0_6 = arith.constant 0 : index
    %c0_7 = arith.constant 0 : index
    %12 = vector.load %arg4[%c0_6, %c0_7] : memref<1x384xf32, #tpu.memory_space<vmem>>, vector<1x384xf32>
    %13 = vector.broadcast %12 : vector<1x384xf32> to vector<128x384xf32>
    %14 = arith.addf %11, %13 : vector<128x384xf32>
    %15 = vector.extract_strided_slice %14 {offsets = [0, 0], sizes = [128, 128], strides = [1, 1]} : vector<128x384xf32> to vector<128x128xf32>
    %16 = vector.extract_strided_slice %14 {offsets = [0, 128], sizes = [128, 128], strides = [1, 1]} : vector<128x384xf32> to vector<128x128xf32>
    %17 = arith.negf %16 : vector<128x128xf32>
    %18 = math.exp %17 : vector<128x128xf32>
    %cst_8 = arith.constant 1.000000e+00 : f32
    %19 = vector.broadcast %cst_8 : f32 to vector<128x128xf32>
    %20 = arith.addf %19, %18 : vector<128x128xf32>
    %21 = arith.divf %19, %20 : vector<128x128xf32>
    %22 = arith.mulf %15, %21 : vector<128x128xf32>
    %23 = vector.extract_strided_slice %14 {offsets = [0, 256], sizes = [128, 128], strides = [1, 1]} : vector<128x384xf32> to vector<128x128xf32>
    %24 = arith.addf %22, %23 : vector<128x128xf32>
    %cst_9 = arith.constant 0.000000e+00 : f32
    %25 = vector.broadcast %cst_9 : f32 to vector<128x128xf32>
    %26 = arith.maximumf %24, %25 : vector<128x128xf32>
    %27 = arith.truncf %26 : vector<128x128xf32> to vector<128x128xbf16>
    %c0_10 = arith.constant 0 : index
    %c0_11 = arith.constant 0 : index
    %28 = vector.load %arg5[%c0_10, %c0_11] : memref<128x128xbf16, #tpu.memory_space<vmem>>, vector<128x128xbf16>
    %cst_12 = arith.constant dense<0.000000e+00> : vector<128x128xf32>
    %29 = tpu.matmul %27, %28, %cst_12 {dimension_numbers = #tpu.dot_dimension_numbers<[1], [0], [0], [1], [0, 0, 1, 1], [], []>} : vector<128x128xbf16>, vector<128x128xbf16>, vector<128x128xf32> -> vector<128x128xf32>
    %30 = arith.truncf %29 : vector<128x128xf32> to vector<128x128xbf16>
    %c0_13 = arith.constant 0 : index
    %c0_14 = arith.constant 0 : index
    %31 = vector.load %arg2[%c0_13, %c0_14] : memref<16x16xbf16, #tpu.memory_space<vmem>>, vector<16x16xbf16>
    %32 = vector.extract_strided_slice %30 {offsets = [0, 0], sizes = [16, 128], strides = [1, 1]} : vector<128x128xbf16> to vector<16x128xbf16>
    %cst_15 = arith.constant dense<0.000000e+00> : vector<16x128xf32>
    %33 = tpu.matmul %31, %32, %cst_15 {dimension_numbers = #tpu.dot_dimension_numbers<[1], [0], [0], [1], [0, 0, 1, 1], [], []>} : vector<16x16xbf16>, vector<16x128xbf16>, vector<16x128xf32> -> vector<16x128xf32>
    %34 = vector.extract_strided_slice %30 {offsets = [16, 0], sizes = [16, 128], strides = [1, 1]} : vector<128x128xbf16> to vector<16x128xbf16>
    %cst_16 = arith.constant dense<0.000000e+00> : vector<16x128xf32>
    %35 = tpu.matmul %31, %34, %cst_16 {dimension_numbers = #tpu.dot_dimension_numbers<[1], [0], [0], [1], [0, 0, 1, 1], [], []>} : vector<16x16xbf16>, vector<16x128xbf16>, vector<16x128xf32> -> vector<16x128xf32>
    %36 = vector.extract_strided_slice %30 {offsets = [32, 0], sizes = [16, 128], strides = [1, 1]} : vector<128x128xbf16> to vector<16x128xbf16>
    %cst_17 = arith.constant dense<0.000000e+00> : vector<16x128xf32>
    %37 = tpu.matmul %31, %36, %cst_17 {dimension_numbers = #tpu.dot_dimension_numbers<[1], [0], [0], [1], [0, 0, 1, 1], [], []>} : vector<16x16xbf16>, vector<16x128xbf16>, vector<16x128xf32> -> vector<16x128xf32>
    %38 = vector.extract_strided_slice %30 {offsets = [48, 0], sizes = [16, 128], strides = [1, 1]} : vector<128x128xbf16> to vector<16x128xbf16>
    %cst_18 = arith.constant dense<0.000000e+00> : vector<16x128xf32>
    %39 = tpu.matmul %31, %38, %cst_18 {dimension_numbers = #tpu.dot_dimension_numbers<[1], [0], [0], [1], [0, 0, 1, 1], [], []>} : vector<16x16xbf16>, vector<16x128xbf16>, vector<16x128xf32> -> vector<16x128xf32>
    %40 = vector.extract_strided_slice %30 {offsets = [64, 0], sizes = [16, 128], strides = [1, 1]} : vector<128x128xbf16> to vector<16x128xbf16>
    %cst_19 = arith.constant dense<0.000000e+00> : vector<16x128xf32>
    %41 = tpu.matmul %31, %40, %cst_19 {dimension_numbers = #tpu.dot_dimension_numbers<[1], [0], [0], [1], [0, 0, 1, 1], [], []>} : vector<16x16xbf16>, vector<16x128xbf16>, vector<16x128xf32> -> vector<16x128xf32>
    %42 = vector.extract_strided_slice %30 {offsets = [80, 0], sizes = [16, 128], strides = [1, 1]} : vector<128x128xbf16> to vector<16x128xbf16>
    %cst_20 = arith.constant dense<0.000000e+00> : vector<16x128xf32>
    %43 = tpu.matmul %31, %42, %cst_20 {dimension_numbers = #tpu.dot_dimension_numbers<[1], [0], [0], [1], [0, 0, 1, 1], [], []>} : vector<16x16xbf16>, vector<16x128xbf16>, vector<16x128xf32> -> vector<16x128xf32>
    %44 = vector.extract_strided_slice %30 {offsets = [96, 0], sizes = [16, 128], strides = [1, 1]} : vector<128x128xbf16> to vector<16x128xbf16>
    %cst_21 = arith.constant dense<0.000000e+00> : vector<16x128xf32>
    %45 = tpu.matmul %31, %44, %cst_21 {dimension_numbers = #tpu.dot_dimension_numbers<[1], [0], [0], [1], [0, 0, 1, 1], [], []>} : vector<16x16xbf16>, vector<16x128xbf16>, vector<16x128xf32> -> vector<16x128xf32>
    %46 = vector.extract_strided_slice %30 {offsets = [112, 0], sizes = [16, 128], strides = [1, 1]} : vector<128x128xbf16> to vector<16x128xbf16>
    %cst_22 = arith.constant dense<0.000000e+00> : vector<16x128xf32>
    %47 = tpu.matmul %31, %46, %cst_22 {dimension_numbers = #tpu.dot_dimension_numbers<[1], [0], [0], [1], [0, 0, 1, 1], [], []>} : vector<16x16xbf16>, vector<16x128xbf16>, vector<16x128xf32> -> vector<16x128xf32>
    %48 = tpu.concatenate %33, %35, %37, %39, %41, %43, %45, %47 in 0 : vector<16x128xf32>, vector<16x128xf32>, vector<16x128xf32>, vector<16x128xf32>, vector<16x128xf32>, vector<16x128xf32>, vector<16x128xf32>, vector<16x128xf32> -> vector<128x128xf32>
    %c0_23 = arith.constant 0 : index
    %c0_24 = arith.constant 0 : index
    %49 = vector.load %arg6[%c0_23, %c0_24] : memref<1x128xf32, #tpu.memory_space<vmem>>, vector<1x128xf32>
    %50 = vector.broadcast %49 : vector<1x128xf32> to vector<128x128xf32>
    %51 = arith.addf %48, %50 : vector<128x128xf32>
    %cst_25 = arith.constant 0.000000e+00 : f32
    %52 = vector.broadcast %cst_25 : f32 to vector<128x128xf32>
    %53 = arith.maximumf %51, %52 : vector<128x128xf32>
    %54 = arith.truncf %53 : vector<128x128xf32> to vector<128x128xbf16>
    %55 = vector.shape_cast %54 : vector<128x128xbf16> to vector<8x16x128xbf16>
    %cst_26 = arith.constant 0.000000e+00 : bf16
    %56 = vector.broadcast %cst_26 : bf16 to vector<1x16x128xbf16>
    %57 = tpu.concatenate %56, %55, %56 in 0 : vector<1x16x128xbf16>, vector<8x16x128xbf16>, vector<1x16x128xbf16> -> vector<10x16x128xbf16>
    %58 = vector.extract_strided_slice %57 {offsets = [0, 0, 0], sizes = [8, 16, 128], strides = [1, 1, 1]} : vector<10x16x128xbf16> to vector<8x16x128xbf16>
    %59 = vector.extract_strided_slice %57 {offsets = [1, 0, 0], sizes = [8, 16, 128], strides = [1, 1, 1]} : vector<10x16x128xbf16> to vector<8x16x128xbf16>
    %60 = vector.extract_strided_slice %57 {offsets = [2, 0, 0], sizes = [8, 16, 128], strides = [1, 1, 1]} : vector<10x16x128xbf16> to vector<8x16x128xbf16>
    %61 = tpu.concatenate %58, %59, %60 in 2 : vector<8x16x128xbf16>, vector<8x16x128xbf16>, vector<8x16x128xbf16> -> vector<8x16x384xbf16>
    %62 = vector.shape_cast %61 : vector<8x16x384xbf16> to vector<128x384xbf16>
    %c0_27 = arith.constant 0 : index
    %c0_28 = arith.constant 0 : index
    %63 = vector.load %arg7[%c0_27, %c0_28] : memref<384x384xbf16, #tpu.memory_space<vmem>>, vector<384x384xbf16>
    %cst_29 = arith.constant dense<0.000000e+00> : vector<128x384xf32>
    %64 = tpu.matmul %62, %63, %cst_29 {dimension_numbers = #tpu.dot_dimension_numbers<[1], [0], [0], [1], [0, 0, 1, 1], [], []>} : vector<128x384xbf16>, vector<384x384xbf16>, vector<128x384xf32> -> vector<128x384xf32>
    %c0_30 = arith.constant 0 : index
    %c0_31 = arith.constant 0 : index
    %65 = vector.load %arg8[%c0_30, %c0_31] : memref<1x384xf32, #tpu.memory_space<vmem>>, vector<1x384xf32>
    %66 = vector.broadcast %65 : vector<1x384xf32> to vector<128x384xf32>
    %67 = arith.addf %64, %66 : vector<128x384xf32>
    %68 = vector.extract_strided_slice %67 {offsets = [0, 0], sizes = [128, 128], strides = [1, 1]} : vector<128x384xf32> to vector<128x128xf32>
    %69 = vector.extract_strided_slice %67 {offsets = [0, 128], sizes = [128, 128], strides = [1, 1]} : vector<128x384xf32> to vector<128x128xf32>
    %70 = arith.negf %69 : vector<128x128xf32>
    %71 = math.exp %70 : vector<128x128xf32>
    %cst_32 = arith.constant 1.000000e+00 : f32
    %72 = vector.broadcast %cst_32 : f32 to vector<128x128xf32>
    %73 = arith.addf %72, %71 : vector<128x128xf32>
    %74 = arith.divf %72, %73 : vector<128x128xf32>
    %75 = arith.mulf %68, %74 : vector<128x128xf32>
    %76 = vector.extract_strided_slice %67 {offsets = [0, 256], sizes = [128, 128], strides = [1, 1]} : vector<128x384xf32> to vector<128x128xf32>
    %77 = arith.addf %75, %76 : vector<128x128xf32>
    %cst_33 = arith.constant 0.000000e+00 : f32
    %78 = vector.broadcast %cst_33 : f32 to vector<128x128xf32>
    %79 = arith.maximumf %77, %78 : vector<128x128xf32>
    %80 = vector.extract_strided_slice %79 {offsets = [0, 0], sizes = [128, 8], strides = [1, 1]} : vector<128x128xf32> to vector<128x8xf32>
    %81 = vector.shape_cast %80 : vector<128x8xf32> to vector<8x16x8xf32>
    %c0_34 = arith.constant 0 : index
    %c0_35 = arith.constant 0 : index
    %c0_36 = arith.constant 0 : index
    %c0_37 = arith.constant 0 : index
    %82 = vector.load %arg9[%c0_34, %c0_35, %c0_36, %c0_37] : memref<1x8x16x8xf32, #tpu.memory_space<vmem>>, vector<1x8x16x8xf32>
    %83 = vector.shape_cast %82 : vector<1x8x16x8xf32> to vector<8x16x8xf32>
    %84 = vector.shape_cast %81 : vector<8x16x8xf32> to vector<1x8x16x8xf32>
    tpu.vector_store %arg9[%c0_34, %c0_35, %c0_36, %c0_37], %84 {strides = array<i32>} : memref<1x8x16x8xf32, #tpu.memory_space<vmem>>, vector<1x8x16x8xf32>,
    return
  }
  func.func @transform_0(%arg0: i32) -> (i32, i32, i32, i32) {
    %c0_i32 = arith.constant 0 : i32
    %c0_i32_0 = arith.constant 0 : i32
    %c0_i32_1 = arith.constant 0 : i32
    %c0_i32_2 = arith.constant 0 : i32
    return %arg0, %c0_i32, %c0_i32_0, %c0_i32_1 : i32, i32, i32, i32
  }
  func.func @transform_1(%arg0: i32) -> (i32, i32) {
    %c0_i32 = arith.constant 0 : i32
    %c0_i32_0 = arith.constant 0 : i32
    %c0_i32_1 = arith.constant 0 : i32
    return %c0_i32, %c0_i32_0 : i32, i32
  }
  func.func @transform_2(%arg0: i32) -> (i32, i32) {
    %c0_i32 = arith.constant 0 : i32
    %c0_i32_0 = arith.constant 0 : i32
    %c0_i32_1 = arith.constant 0 : i32
    return %c0_i32, %c0_i32_0 : i32, i32
  }
  func.func @transform_3(%arg0: i32) -> (i32, i32) {
    %c0_i32 = arith.constant 0 : i32
    %c0_i32_0 = arith.constant 0 : i32
    %c0_i32_1 = arith.constant 0 : i32
    return %c0_i32, %c0_i32_0 : i32, i32
  }
  func.func @transform_4(%arg0: i32) -> (i32, i32) {
    %c0_i32 = arith.constant 0 : i32
    %c0_i32_0 = arith.constant 0 : i32
    %c0_i32_1 = arith.constant 0 : i32
    return %c0_i32, %c0_i32_0 : i32, i32
  }
  func.func @transform_5(%arg0: i32) -> (i32, i32) {
    %c0_i32 = arith.constant 0 : i32
    %c0_i32_0 = arith.constant 0 : i32
    %c0_i32_1 = arith.constant 0 : i32
    return %c0_i32, %c0_i32_0 : i32, i32
  }
  func.func @transform_6(%arg0: i32) -> (i32, i32) {
    %c0_i32 = arith.constant 0 : i32
    %c0_i32_0 = arith.constant 0 : i32
    %c0_i32_1 = arith.constant 0 : i32
    return %c0_i32, %c0_i32_0 : i32, i32
  }
  func.func @transform_7(%arg0: i32) -> (i32, i32) {
    %c0_i32 = arith.constant 0 : i32
    %c0_i32_0 = arith.constant 0 : i32
    %c0_i32_1 = arith.constant 0 : i32
    return %c0_i32, %c0_i32_0 : i32, i32
  }
  func.func @transform_8(%arg0: i32) -> (i32, i32, i32, i32) {
    %c0_i32 = arith.constant 0 : i32
    %c0_i32_0 = arith.constant 0 : i32
    %c0_i32_1 = arith.constant 0 : i32
    %c0_i32_2 = arith.constant 0 : i32
    return %arg0, %c0_i32, %c0_i32_0, %c0_i32_1 : i32, i32, i32, i32
  }
}

</mosaic_0001>

<bundles_post_ra>
// kernel: stconv_forward.1
= control target key start
LH: loop header
LB: loop body
LE: loop exit
PB: predicated region body
PF: predicated region fallthrough
CT: control target
= control target key end

     0   :  { %s3305_s27 = smov 0   ;;  %s4111_s0 = inlined_call_operand.vmem [shape: f32[2,8,16,4], index: 0, kind: input, shape index: {}]   ;;  %s4112_s1 = inlined_call_operand.vmem [shape: bf16[16,16], index: 1, kind: input, shape index: {}]   ;;  %s4113_s2 = inlined_call_operand.vmem [shape: bf16[12,384], index: 2, kind: input, shape index: {}]   ;;  %s4114_s3 = inlined_call_operand.vmem [shape: f32[1,384], index: 3, kind: input, shape index: {}]   ;;  %s4115_s4 = inlined_call_operand.vmem [shape: bf16[128,128], index: 4, kind: input, shape index: {}]   ;;  %s4116_s5 = inlined_call_operand.vmem [shape: f32[1,128], index: 5, kind: input, shape index: {}]   ;;  %s4117_s6 = inlined_call_operand.vmem [shape: bf16[384,384], index: 6, kind: input, shape index: {}]   ;;  %s4118_s7 = inlined_call_operand.vmem [shape: f32[1,384], index: 7, kind: input, shape index: {}]   ;;  %s4119_s8 = inlined_call_operand.vmem [shape: f32[2,8,16,8], index: 8, kind: output, shape index: {}]  }
   0x1 LB: > { %s2524_s28 = sadd.s32 4294967295, %s3253_s27   ;;  %p2528_p0 = scmp.ge.s32.totalorder %s3253_s27, 1  ;;  %s3253_s27 = sphi %s3305_s27, %s18_s27  }
   0x2   : > { %p262_p1 = scmp.lt.s32.totalorder %s3253_s27, 3 }
   0x4   : > { %p263_p2 = pnand %p2528_p0, %p262_p1 }
   0x5   : > { %p296_p3 = scmp.lt.s32.totalorder (!%p263_p2), %s2524_s28, 1  ;;  %vm465_vm0 = vcmask (!%p263_p2), 1045504   ;;  %v3010_v0 = vld [vmem:[%s4113_s2 + $0x4] ss:$12 sps:$4 sm:$0x3f] (!%p263_p2)   ;;  %v3255_v1 = vmov (!%p263_p2), 0  }
   0x6   : > { %266 = sbr.rel (%p263_p2) target bundleno = 1212 (0x4bc), region = 52  ;;  %507 = vmatprep.mubr.bf16.mxu0 (!%p263_p2), %v3255_v1  ;;  %547 = vmatprep.mubr.bf16.mxu1 (!%p263_p2), %v3255_v1  ;;  %v3012_v2 = vld [vmem:[%s4113_s2] ss:$12 sps:$4 sm:$0x3f] (!%p263_p2)   ;;  %s3256_s15 = smov (!%p263_p2), 4   ;;  %vm372_vm1 = vcmask (!%p263_p2), 31744  }
   0x7   : > { %2536 = vmatprep.subr.msk.bf16.mxu0 (!%p263_p2), %vm465_vm0, %v3010_v0  ;;  %2930 = vmatprep.subr.msk.bf16.mxu1 (!%p263_p2), %vm465_vm0, %v3010_v0  ;;  %v467_v3 = vsel (!%p263_p2), %vm465_vm0, %v3012_v2, 0  ;;  %s3257_s16 = smov (!%p263_p2), 8   ;;  %v3013_v28 = vld [vmem:[%s4113_s2 + $0x8] ss:$12 sps:$4 sm:$0x3f] (!%p263_p2)   ;;  %vm397_vm2 = vcmask (!%p263_p2), 64512  }
   0x8   : > { %476 = vmatpush1.bf16.msra.mxu0 (!%p263_p2), %v467_v3  ;;  %2931 = vmatpush1.bf16.msra.mxu1 (!%p263_p2), %v467_v3  ;;  %v473_v29 = vsel (!%p263_p2), %vm465_vm0, %v3013_v28, 0  ;;  %vm448_vm3 = vcmask (!%p263_p2), 97280   ;;  %v3014_v62 = vld [vmem:[%s4115_s4] sm:$0xff] (!%p263_p2)   ;;  %v3015_v63 = vld [vmem:[%s4115_s4 + $0x8] sm:$0xff] (!%p263_p2)   ;;  %v3016_v0 = vld [vmem:[%s4115_s4 + $0x10] sm:$0xff] (!%p263_p2)   ;;  %vm3259_vm4 = vmmov (!%p263_p2), 0  }
   0x9   : > { %2996 = vmatprep.subr.msk.bf16.mxu1 (!%p263_p2), %vm465_vm0, %v3013_v28  ;;  %v3017_v2 = vld [vmem:[%s4115_s4 + $0x18] sm:$0xff] (!%p263_p2)   ;;  %v3018_v3 = vld [vmem:[%s4115_s4 + $0x20] sm:$0xff] (!%p263_p2)   ;;  %vm1013_vm5 = vcmask (!%p263_p2), 130048  }
   0xd   : > { %s4121_s28 = smov (!%p296_p3, %s2524_s28), 1 }
   0xe   : > { %s2677_s11 = sshll.u32 %s4121_s28, 7 }
   0xf   : > { %s3332_s14 = scalar_lea.vmem %s4111_s0, %s2677_s11  ;;  %s4009_s18 = scalar_lea.vmem %s4119_s8, %s2677_s11 }
  0x10   : > { %v315_v4 = vld [vmem:[%s3332_s14 + $0x40] sm:$0xff]  ;;  %v316_v5 = vld [vmem:[%s3332_s14 + $0x48] sm:$0xff]  ;;  %v317_v9 = vld [vmem:[%s3332_s14 + $0x50] sm:$0xff] }
  0x11   : > { %v307_v6 = vld [vmem:[%s3332_s14] sm:$0xff]  ;;  %v3337_v7 = vpack.c.bf16 %v316_v5, %v315_v4  ;;  %v308_v8 = vld [vmem:[%s3332_s14 + $0x8] sm:$0xff]  ;;  %v318_v10 = vld [vmem:[%s3332_s14 + $0x58] sm:$0xff] }
  0x12   : > { %v323_v11 = vpack.c.bf16 %v308_v8, %v307_v6  ;;  %v309_v12 = vld [vmem:[%s3332_s14 + $0x10] sm:$0xff]  ;;  %v310_v13 = vld [vmem:[%s3332_s14 + $0x18] sm:$0xff]  ;;  %v3346_v14 = vpack.c.bf16 %v318_v10, %v317_v9  ;;  %v311_v16 = vld [vmem:[%s3332_s14 + $0x20] sm:$0xff] }
  0x13   : > { %347 = vrot.lane.b32.xlu1 %v3337_v7, %s3256_s15  ;;  %v324_v15 = vpack.c.bf16 %v310_v13, %v309_v12  ;;  %v312_v17 = vld [vmem:[%s3332_s14 + $0x28] sm:$0xff]  ;;  %v319_v18 = vld [vmem:[%s3332_s14 + $0x60] sm:$0xff]  ;;  %v313_v21 = vld [vmem:[%s3332_s14 + $0x30] sm:$0xff] }
  0x14   : > { %339 = vrot.lane.b32.xlu0 %v323_v11, %s3256_s15  ;;  %v320_v19 = vld [vmem:[%s3332_s14 + $0x68] sm:$0xff]  ;;  %v3354_v20 = vpack.c.bf16 %v312_v17, %v311_v16  ;;  %v314_v22 = vld [vmem:[%s3332_s14 + $0x38] sm:$0xff]  ;;  %v321_v24 = vld [vmem:[%s3332_s14 + $0x70] sm:$0xff] }
  0x15   : > { %v3359_v23 = vpack.c.bf16 %v320_v19, %v319_v18  ;;  %v322_v25 = vld [vmem:[%s3332_s14 + $0x78] sm:$0xff]  ;;  %v326_v26 = vpack.c.bf16 %v314_v22, %v313_v21  ;;  %v3019_v4 = vld [vmem:[%s4115_s4 + $0x28] sm:$0xff]   ;;  %v3020_v5 = vld [vmem:[%s4115_s4 + $0x30] sm:$0xff]  }
  0x16   : > { %v330_v27 = vpack.c.bf16 %v322_v25, %v321_v24  ;;  %v3021_v6 = vld [vmem:[%s4115_s4 + $0x38] sm:$0xff]   ;;  %v3452_v10 = vld [vmem:[%s4114_s3] sm:$0x7] }
  0x17   : > { %364 = vrot.lane.b32.xlu1 %v3346_v14, %s3257_s16 }
  0x18   : > { %356 = vrot.lane.b32.xlu0 %v324_v15, %s3257_s16 }
  0x1b   : > { %358 = vrot.lane.b32.xlu1 %v3354_v20, %s3257_s16 }
  0x1c   : > { %341 = vrot.lane.b32.xlu0 %v324_v15, %s3256_s15 }
  0x1f   : > { %366 = vrot.lane.b32.xlu1 %v3359_v23, %s3257_s16 }
  0x20   : > { %349 = vrot.lane.b32.xlu0 %v3346_v14, %s3256_s15 }
  0x23   : > { %360 = vrot.lane.b32.xlu1 %v326_v26, %s3257_s16 }
  0x24   : > { %343 = vrot.lane.b32.xlu0 %v3354_v20, %s3256_s15 }
  0x27   : > { %368 = vrot.lane.b32.xlu1 %v330_v27, %s3257_s16 }
  0x28   : > { %351 = vrot.lane.b32.xlu0 %v3359_v23, %s3256_s15 }
  0x2b   : > { %362 = vrot.lane.b32.xlu1 %v3337_v7, %s3257_s16 }
  0x2c   : > { %345 = vrot.lane.b32.xlu0 %v326_v26, %s3256_s15 }
  0x2f   : > { %370 = vrot.lane.b32.xlu1 %v3255_v1, %s3257_s16 }
  0x30   : > { %353 = vrot.lane.b32.xlu0 %v330_v27, %s3256_s15 }
  0x85   : > { %v348_v30 = vpop.permute.xlu1 %347 }
  0x86   : > { %v340_v31 = vpop.permute.xlu0 %339  ;;  %v387_v32 = vsel %vm372_vm1, %v326_v26, %v348_v30 }
  0x87   : > { %v375_v34 = vsel %vm372_vm1, 0, %v340_v31 }
  0x89   : > { %v365_v33 = vpop.permute.xlu1 %364 }
  0x8a   : > { %v407_v35 = vsel %vm397_vm2, %v387_v32, %v365_v33  ;;  %v357_v36 = vpop.permute.xlu0 %356 }
  0x8b   : > { %v399_v37 = vsel %vm397_vm2, %v375_v34, %v357_v36  ;;  %2541 = vmatmul.mubr.msk.bf16.vlgmr.msra.gmra.mrb[0].mxu1 %vm448_vm3, %v407_v35 }
  0x8c   : > { %2537 = vmatmul.mubr.msk.bf16.vlgmr.msra.gmra.mrb[0].mxu0 %vm448_vm3, %v399_v37  ;;  %557 = vmatprep.mubr.bf16.mxu1 %v3255_v1 }
  0x8d   : > { %v359_v38 = vpop.permute.xlu1 %358  ;;  %517 = vmatprep.mubr.bf16.mxu0 %v3255_v1  ;;  %2801 = vmatpush3.bf16.msra.mxu1 %v473_v29 }
  0x8e   : > { %v342_v39 = vpop.permute.xlu0 %341  ;;  %2818 = vmatprep.subr.bf16.mxu1 %v3014_v62 }
  0x8f   : > { %v378_v40 = vsel %vm372_vm1, %v323_v11, %v342_v39 }
  0x90   : > { %v401_v41 = vsel %vm397_vm2, %v378_v40, %v359_v38 }
  0x91   : > { %v367_v42 = vpop.permute.xlu1 %366 }
  0x92   : > { %v350_v43 = vpop.permute.xlu0 %349 }
  0x93   : > { %v390_v44 = vsel %vm372_vm1, %v3337_v7, %v350_v43  ;;  %v420_v7 = vlaneseq }
  0x94   : > { %v409_v45 = vsel %vm397_vm2, %v390_v44, %v367_v42  ;;  %2538 = vmatmul.mubr.msk.bf16.gmra.mrb[4].mxu0 %vm448_vm3, %v401_v41 }
  0x95   : > { %2542 = vmatmul.mubr.msk.bf16.gmra.mrb[4].mxu1 %vm448_vm3, %v409_v45  ;;  %v361_v46 = vpop.permute.xlu1 %360  ;;  %527 = vmatprep.mubr.bf16.mxu0 %v3255_v1  ;;  %v3446_v8 = vshrl.u32 %v420_v7, 7 }
  0x96   : > { %v344_v47 = vpop.permute.xlu0 %343  ;;  %567 = vmatprep.mubr.bf16.mxu1 %v3255_v1 }
  0x97   : > { %v381_v48 = vsel %vm372_vm1, %v324_v15, %v344_v47  ;;  %v426_v9 = vsub.s32 1, %v3446_v8 }
  0x98   : > { %v403_v49 = vsel %vm397_vm2, %v381_v48, %v361_v46 }
  0x99   : > { %v369_v50 = vpop.permute.xlu1 %368  ;;  %v3457_v11 = vrot.slane %v3452_v10, %v426_v9 }
  0x9a   : > { %v352_v51 = vpop.permute.xlu0 %351 }
  0x9b   : > { %v393_v52 = vsel %vm372_vm1, %v3346_v14, %v352_v51 }
  0x9c   : > { %v411_v53 = vsel %vm397_vm2, %v393_v52, %v369_v50  ;;  %2539 = vmatmul.mubr.msk.bf16.gmra.mrb[8].mxu0 %vm448_vm3, %v403_v49 }
  0x9d   : > { %2543 = vmatmul.mubr.msk.bf16.gmra.mrb[8].mxu1 %vm448_vm3, %v411_v53  ;;  %v363_v54 = vpop.permute.xlu1 %362  ;;  %537 = vmatprep.mubr.bf16.mxu0 %v3255_v1 }
  0x9e   : > { %v346_v55 = vpop.permute.xlu0 %345  ;;  %577 = vmatprep.mubr.bf16.mxu1 %v3255_v1 }
  0x9f   : > { %v384_v56 = vsel %vm372_vm1, %v3354_v20, %v346_v55 }
  0xa0   : > { %v405_v57 = vsel %vm397_vm2, %v384_v56, %v363_v54 }
  0xa1   : > { %v371_v58 = vpop.permute.xlu1 %370 }
  0xa2   : > { %v354_v59 = vpop.permute.xlu0 %353 }
  0xa3   : > { %v396_v60 = vsel %vm372_vm1, %v3359_v23, %v354_v59 }
  0xa4   : > { %v413_v61 = vsel %vm397_vm2, %v396_v60, %v371_v58  ;;  %2540 = vmatmul.mubr.msk.bf16.gmra.mrb[12].mxu0 %vm448_vm3, %v405_v57 }
  0xa5   : > { %2544 = vmatmul.mubr.msk.bf16.gmra.mrb[12].mxu1 %vm448_vm3, %v413_v61 }
  0xa6   : > { %2802 = vmatprep.mubr.msk.bf16.mxu1 %vm448_vm3, %v399_v37 }
  0xad   : > { %2803 = vmatmul.mubr.msk.bf16.vlgmr.msra.gmra.mrb[16].mxu1 %vm448_vm3, %v401_v41 }
  0xae   : > { %2806 = vmatprep.mubr.msk.bf16.mxu1 %vm448_vm3, %v403_v49  ;;  %2819 = vmatpush3.bf16.msra.mxu1 %v3014_v62 }
  0xaf   : > { %2820 = vmatprep.subr.bf16.mxu1 %v3015_v63 }
  0xb2   : > { %2821 = vmatpush3.bf16.msra.mxu1 %v3015_v63 }
  0xb3   : > { %2822 = vmatprep.subr.bf16.mxu1 %v3016_v0 }
  0xb5   : > { %2807 = vmatmul.mubr.msk.bf16.gmra.mrb[20].mxu1 %vm448_vm3, %v405_v57 }
  0xb6   : > { %2810 = vmatprep.mubr.msk.bf16.mxu1 %vm448_vm3, %v407_v35  ;;  %2823 = vmatpush3.bf16.msra.mxu1 %v3016_v0 }
  0xb7   : > { %2824 = vmatprep.subr.bf16.mxu1 %v3017_v2 }
  0xba   : > { %2825 = vmatpush3.bf16.msra.mxu1 %v3017_v2 }
  0xbb   : > { %2826 = vmatprep.subr.bf16.mxu1 %v3018_v3 }
  0xbd   : > { %2811 = vmatmul.mubr.msk.bf16.gmra.mrb[24].mxu1 %vm448_vm3, %v409_v45 }
  0xbe   : > { %2814 = vmatprep.mubr.msk.bf16.mxu1 %vm448_vm3, %v411_v53  ;;  %2827 = vmatpush3.bf16.msra.mxu1 %v3018_v3  ;;  %v422_v53 = vsub.s32 0, %v3446_v8 }
  0xbf   : > { %2828 = vmatprep.subr.bf16.mxu1 %v3019_v4 }
  0xc2   : > { %2829 = vmatpush3.bf16.msra.mxu1 %v3019_v4  ;;  %v3499_v4 = vrot.slane %v3452_v10, %v422_v53 }
  0xc3   : > { %2830 = vmatprep.subr.bf16.mxu1 %v3020_v5 }
  0xc5   : > { %2815 = vmatmul.mubr.msk.bf16.gmra.mrb[28].mxu1 %vm448_vm3, %v413_v61 }
  0xc6   : > { %2831 = vmatpush3.bf16.msra.mxu1 %v3020_v5 }
  0xc7   : > { %2832 = vmatprep.subr.bf16.mxu1 %v3021_v6 }
  0xca   : > { %2833 = vmatpush3.bf16.msra.mxu1 %v3021_v6 }
 0x15e   : > { %v3459_v12 = vpop.f32.mrb[0].mxu1 }
 0x15f   : > { %v3461_v13 = vpop.f32.mrb[0].mxu0  ;;  %v551_v14 = vpop.f32.mrb[1].mxu1 }
 0x160   : > { %v511_v15 = vpop.f32.mrb[1].mxu0  ;;  %v552_v16 = vadd.f32 %v551_v14, %v3457_v11  ;;  %v3464_v17 = vpop.f32.mrb[2].mxu1 }
 0x161   : > { %v512_v18 = vadd.f32 %v511_v15, %v3457_v11  ;;  %v3467_v19 = vpop.f32.mrb[2].mxu0  ;;  %v555_v20 = vpop.f32.mrb[3].mxu1 }
 0x162   : > { %v2561_v21 = vmul.f32 -1.442695, %v552_v16  ;;  %v515_v22 = vpop.f32.mrb[3].mxu0  ;;  %v556_v23 = vadd.f32 %v555_v20, %v3457_v11 }
 0x163   : > { %v2553_v24 = vmul.f32 -1.442695, %v512_v18  ;;  %v516_v25 = vadd.f32 %v515_v22, %v3457_v11 }
 0x164   : > { %3119 = vpow2.f32 %v2561_v21  ;;  %v2562_v26 = vmul.f32 -1.442695, %v556_v23  ;;  %v430_v21 = vsub.s32 2, %v3446_v8  ;;  %v510_v23 = vadd.f32 %v3461_v13, %v3499_v4 }
 0x165   : > { %3121 = vpow2.f32 %v2553_v24  ;;  %v2554_v27 = vmul.f32 -1.442695, %v516_v25  ;;  %v550_v24 = vadd.f32 %v3459_v12, %v3499_v4 }
 0x166   : > { %3123 = vpow2.f32 %v2562_v26 }
 0x167   : > { %3125 = vpow2.f32 %v2554_v27  ;;  %v3471_v28 = vpop.f32.mrb[4].mxu0 }
 0x168   : > { %v521_v29 = vpop.f32.mrb[5].mxu0  ;;  %v3473_v30 = vpop.f32.mrb[4].mxu1 }
 0x169   : > { %v522_v31 = vadd.f32 %v521_v29, %v3457_v11  ;;  %v3476_v32 = vpop.f32.mrb[6].mxu0  ;;  %v561_v33 = vpop.f32.mrb[5].mxu1 }
 0x16a   : > { %v562_v34 = vadd.f32 %v561_v33, %v3457_v11  ;;  %v525_v35 = vpop.f32.mrb[7].mxu0  ;;  %v3479_v36 = vpop.f32.mrb[6].mxu1  ;;  %v554_v33 = vadd.f32 %v3464_v17, %v3499_v4 }
 0x16b   : > { %v2555_v37 = vmul.f32 -1.442695, %v522_v31  ;;  %v526_v38 = vadd.f32 %v525_v35, %v3457_v11  ;;  %v565_v39 = vpop.f32.mrb[7].mxu1 }
 0x16c   : > { %v2563_v40 = vmul.f32 -1.442695, %v562_v34  ;;  %v566_v41 = vadd.f32 %v565_v39, %v3457_v11 }
 0x16d   : > { %3127 = vpow2.f32 %v2555_v37  ;;  %v2556_v42 = vmul.f32 -1.442695, %v526_v38 }
 0x16e   : > { %v3120_v43 = vpop.eup %3119  ;;  %3129 = vpow2.f32 %v2563_v40  ;;  %v2564_v44 = vmul.f32 -1.442695, %v566_v41 }
 0x16f   : > { %v3122_v45 = vpop.eup %3121  ;;  %v741_v46 = vadd.f32 1.0, %v3120_v43  ;;  %3131 = vpow2.f32 %v2556_v42  ;;  %v3483_v47 = vpop.f32.mrb[8].mxu0  ;;  %v514_v43 = vadd.f32 %v3467_v19, %v3499_v4 }
 0x170   : > { %v3124_v48 = vpop.eup %3123  ;;  %v733_v49 = vadd.f32 1.0, %v3122_v45  ;;  %3133 = vpow2.f32 %v2564_v44  ;;  %v531_v50 = vpop.f32.mrb[9].mxu0 }
 0x171   : > { %v3485_v51 = vpop.f32.mrb[8].mxu1  ;;  %v3126_v52 = vpop.eup %3125  ;;  %3135 = vrcp.f32 %v741_v46  ;;  %v742_v54 = vadd.f32 1.0, %v3124_v48  ;;  %v532_v55 = vadd.f32 %v531_v50, %v3457_v11 }
 0x172   : > { %v3489_v56 = vpop.f32.mrb[10].mxu0  ;;  %v571_v57 = vpop.f32.mrb[9].mxu1  ;;  %3137 = vrcp.f32 %v733_v49  ;;  %v734_v58 = vadd.f32 1.0, %v3126_v52 }
 0x173   : > { %v572_v59 = vadd.f32 %v571_v57, %v3457_v11  ;;  %v535_v60 = vpop.f32.mrb[11].mxu0  ;;  %v3492_v61 = vpop.f32.mrb[10].mxu1  ;;  %3139 = vrcp.f32 %v742_v54  ;;  %v2557_v62 = vmul.f32 -1.442695, %v532_v55  ;;  %v3527_v54 = vrot.slane %v3452_v10, %v430_v21 }
 0x174   : > { %v536_v63 = vadd.f32 %v535_v60, %v3457_v11  ;;  %v575_v0 = vpop.f32.mrb[11].mxu1  ;;  %3141 = vrcp.f32 %v734_v58 }
 0x175   : > { %v2565_v2 = vmul.f32 -1.442695, %v572_v59  ;;  %v576_v3 = vadd.f32 %v575_v0, %v3457_v11  ;;  %3143 = vpow2.f32 %v2557_v62 }
 0x176   : > { %v2558_v5 = vmul.f32 -1.442695, %v536_v63 }
 0x177   : > { %3145 = vpow2.f32 %v2565_v2  ;;  %v2566_v6 = vmul.f32 -1.442695, %v576_v3  ;;  %v3128_v7 = vpop.eup %3127  ;;  %v3501_v14 = vpop.f32.mrb[12].mxu0 }
 0x178   : > { %3147 = vpow2.f32 %v2558_v5  ;;  %v3130_v15 = vpop.eup %3129  ;;  %v735_v16 = vadd.f32 1.0, %v3128_v7  ;;  %v541_v18 = vpop.f32.mrb[13].mxu0  ;;  %v520_v5 = vadd.f32 %v3471_v28, %v3499_v4 }
 0x179   : > { %3149 = vpow2.f32 %v2566_v6  ;;  %v3503_v20 = vpop.f32.mrb[12].mxu1  ;;  %v3132_v22 = vpop.eup %3131  ;;  %v743_v25 = vadd.f32 1.0, %v3130_v15  ;;  %v542_v26 = vadd.f32 %v541_v18, %v3457_v11 }
 0x17a   : > { %v3511_v27 = vpop.f32.mrb[14].mxu0  ;;  %v581_v29 = vpop.f32.mrb[13].mxu1  ;;  %3151 = vrcp.f32 %v735_v16  ;;  %v736_v34 = vadd.f32 1.0, %v3132_v22  ;;  %v560_v16 = vadd.f32 %v3473_v30, %v3499_v4 }
 0x17b   : > { %v3134_v31 = vpop.eup %3133  ;;  %v582_v35 = vadd.f32 %v581_v29, %v3457_v11  ;;  %v545_v37 = vpop.f32.mrb[15].mxu0  ;;  %3153 = vrcp.f32 %v743_v25  ;;  %v2559_v39 = vmul.f32 -1.442695, %v542_v26  ;;  %v564_v29 = vadd.f32 %v3479_v36, %v3499_v4 }
 0x17c   : > { %v3516_v38 = vpop.f32.mrb[14].mxu1  ;;  %v3136_v13 = vpop.eup %3135  ;;  %v744_v12 = vadd.f32 1.0, %v3134_v31  ;;  %v546_v40 = vadd.f32 %v545_v37, %v3457_v11  ;;  %3155 = vrcp.f32 %v736_v34  ;;  %v530_v36 = vadd.f32 %v3483_v47, %v3499_v4 }
 0x17d   : > { %v585_v41 = vpop.f32.mrb[15].mxu1  ;;  %v3138_v42 = vpop.eup %3137  ;;  %v2567_v17 = vmul.f32 -1.442695, %v582_v35  ;;  %v3522_v49 = vmul.f32 %v3136_v13, %v550_v24  ;;  %v524_v24 = vadd.f32 %v3476_v32, %v3499_v4 }
 0x17e   : > { %v586_v44 = vadd.f32 %v585_v41, %v3457_v11  ;;  %v3140_v45 = vpop.eup %3139  ;;  %3157 = vrcp.f32 %v744_v12  ;;  %v2560_v46 = vmul.f32 -1.442695, %v546_v40  ;;  %v781_v48 = vmul.f32 %v3138_v42, %v510_v23 }
 0x17f   : > { %v3142_v50 = vpop.eup %3141  ;;  %3159 = vpow2.f32 %v2559_v39  ;;  %v3529_v55 = vmul.f32 %v3140_v45, %v554_v33 }
 0x180   : > { %v2568_v52 = vmul.f32 -1.442695, %v586_v44  ;;  %v3144_v19 = vpop.eup %3143  ;;  %3161 = vpow2.f32 %v2567_v17  ;;  %v782_v57 = vmul.f32 %v3142_v50, %v514_v43  ;;  %v2804_v59 = vpop.f32.mrb[16].mxu1 }
 0x181   : > { %v3146_v11 = vpop.eup %3145  ;;  %v737_v58 = vadd.f32 1.0, %v3144_v19  ;;  %3163 = vpow2.f32 %v2560_v46  ;;  %v622_v63 = vpop.f32.mrb[17].mxu1  ;;  %v631_v25 = vadd.f32 %v2804_v59, %v3527_v54  ;;  %v570_v59 = vadd.f32 %v3485_v51, %v3499_v4 }
 0x182   : > { %v3148_v60 = vpop.eup %3147  ;;  %v745_v62 = vadd.f32 1.0, %v3146_v11  ;;  %3165 = vpow2.f32 %v2568_v52  ;;  %v623_v3 = vadd.f32 %v622_v63, %v3527_v54  ;;  %v2805_v10 = vpop.f32.mrb[18].mxu1 }
 0x183   : > { %v3150_v0 = vpop.eup %3149  ;;  %3167 = vrcp.f32 %v737_v58  ;;  %v738_v2 = vadd.f32 1.0, %v3148_v60  ;;  %v625_v7 = vpop.f32.mrb[19].mxu1  ;;  %v634_v35 = vadd.f32 %v2805_v10, %v3527_v54  ;;  %v534_v60 = vadd.f32 %v3489_v56, %v3499_v4 }
 0x184   : > { %3169 = vrcp.f32 %v745_v62  ;;  %v746_v6 = vadd.f32 1.0, %v3150_v0  ;;  %v3152_v15 = vpop.eup %3151  ;;  %v797_v18 = vadd.f32 %v781_v48, %v623_v3  ;;  %v626_v22 = vadd.f32 %v625_v7, %v3527_v54 }
 0x185   : > { %3171 = vrcp.f32 %v738_v2  ;;  %v3154_v23 = vpop.eup %3153  ;;  %v783_v26 = vmul.f32 %v3152_v15, %v520_v5  ;;  %v574_v10 = vadd.f32 %v3492_v61, %v3499_v4 }
 0x186   : > { %3173 = vrcp.f32 %v746_v6  ;;  %v3156_v28 = vpop.eup %3155  ;;  %v798_v31 = vadd.f32 %v782_v57, %v626_v22  ;;  %v791_v33 = vmul.f32 %v3154_v23, %v560_v16  ;;  %v813_v12 = vmax.f32 %v797_v18, 0.0 }
 0x187   : > { %v799_v30 = vadd.f32 %v783_v26, %v631_v25  ;;  %v784_v37 = vmul.f32 %v3156_v28, %v524_v24 }
 0x188   : > { %v3158_v34 = vpop.eup %3157  ;;  %v814_v39 = vmax.f32 %v798_v31, 0.0  ;;  %v2808_v40 = vpop.f32.mrb[20].mxu1 }
 0x189   : > { %v3160_v13 = vpop.eup %3159  ;;  %v792_v32 = vmul.f32 %v3158_v34, %v564_v29  ;;  %v800_v43 = vadd.f32 %v784_v37, %v634_v35  ;;  %v638_v17 = vpop.f32.mrb[21].mxu1  ;;  %v815_v19 = vmax.f32 %v799_v30, 0.0  ;;  %v540_v34 = vadd.f32 %v3501_v14, %v3499_v4 }
 0x18a   : > { %v3162_v41 = vpop.eup %3161  ;;  %v739_v42 = vadd.f32 1.0, %v3160_v13  ;;  %v2809_v46 = vpop.f32.mrb[22].mxu1  ;;  %v829_v48 = vpack.c.bf16 %v814_v39, %v813_v12  ;;  %v639_v0 = vadd.f32 %v638_v17, %v3527_v54  ;;  %v580_v13 = vadd.f32 %v3503_v20, %v3499_v4 }
 0x18b   : > { %v3164_v44 = vpop.eup %3163  ;;  %v747_v45 = vadd.f32 1.0, %v3162_v41  ;;  %v816_v57 = vmax.f32 %v800_v43, 0.0  ;;  %v641_v11 = vpop.f32.mrb[23].mxu1  ;;  %v544_v12 = vadd.f32 %v3511_v27, %v3499_v4  ;;  %v647_v43 = vadd.f32 %v2808_v40, %v3527_v54 }
 0x18c   : > { %v3166_v50 = vpop.eup %3165  ;;  %3175 = vrcp.f32 %v739_v42  ;;  %v740_v52 = vadd.f32 1.0, %v3164_v44  ;;  %2834 = vmatprep.mubr.bf16.mxu1 %v829_v48  ;;  %v642_v7 = vadd.f32 %v641_v11, %v3527_v54  ;;  %v584_v42 = vadd.f32 %v3516_v38, %v3499_v4 }
 0x18d   : > { %v3168_v58 = vpop.eup %3167  ;;  %3177 = vrcp.f32 %v747_v45  ;;  %v748_v62 = vadd.f32 1.0, %v3166_v50  ;;  %v830_v63 = vpack.c.bf16 %v816_v57, %v815_v19  ;;  %v650_v44 = vadd.f32 %v2809_v46, %v3527_v54 }
 0x18e   : > { %v3170_v47 = vpop.eup %3169  ;;  %3179 = vrcp.f32 %v740_v52  ;;  %v785_v2 = vmul.f32 %v3168_v58, %v530_v36 }
 0x18f   : > { %v3172_v3 = vpop.eup %3171  ;;  %3181 = vrcp.f32 %v748_v62  ;;  %v793_v5 = vmul.f32 %v3170_v47, %v570_v59  ;;  %2835 = vmatmul.mubr.bf16.vlgmr.msra.gmra.mrb[32].mxu1 %v830_v63 }
 0x190   : > { %v3174_v6 = vpop.eup %3173  ;;  %v801_v51 = vadd.f32 %v785_v2, %v639_v0  ;;  %v786_v56 = vmul.f32 %v3172_v3, %v534_v60  ;;  %v2812_v15 = vpop.f32.mrb[24].mxu1 }
 0x191   : > { %v794_v16 = vmul.f32 %v3174_v6, %v574_v10  ;;  %v663_v22 = vadd.f32 %v2812_v15, %v3527_v54  ;;  %v654_v23 = vpop.f32.mrb[25].mxu1 }
 0x192   : > { %v802_v18 = vadd.f32 %v786_v56, %v642_v7  ;;  %v655_v24 = vadd.f32 %v654_v23, %v3527_v54  ;;  %v2813_v25 = vpop.f32.mrb[26].mxu1  ;;  %v817_v26 = vmax.f32 %v801_v51, 0.0  ;;  %v3258_v23 = vmov 0.0  }
 0x193   : > { %v807_v61 = vadd.f32 %v791_v33, %v663_v22  ;;  %v666_v29 = vadd.f32 %v2813_v25, %v3527_v54  ;;  %v657_v31 = vpop.f32.mrb[27].mxu1  ;;  %2856 = vmatprep.subr.bf16.mxu1 %v3258_v23  ;;  %2850 = vmatprep.subr.bf16.mxu0 %v3258_v23 }
 0x194   : > { %v818_v28 = vmax.f32 %v802_v18, 0.0  ;;  %v805_v30 = vadd.f32 %v3522_v49, %v655_v24  ;;  %v658_v35 = vadd.f32 %v657_v31, %v3527_v54  ;;  %2852 = vmatprep.mubr.msk.bf16.mxu0 %vm3259_vm4, %v3258_v23 }
 0x195   : > { %v808_v39 = vadd.f32 %v792_v32, %v666_v29  ;;  %v823_v36 = vmax.f32 %v807_v61, 0.0 }
 0x196   : > { %v3176_v37 = vpop.eup %3175  ;;  %v831_v41 = vpack.c.bf16 %v818_v28, %v817_v26  ;;  %v806_v49 = vadd.f32 %v3529_v55, %v658_v35  ;;  %v821_v50 = vmax.f32 %v805_v30, 0.0  ;;  %v3022_v28 = vld [vmem:[%s4112_s1] sm:$0xff]  }
 0x197   : > { %v3178_v33 = vpop.eup %3177  ;;  %v787_v14 = vmul.f32 %v3176_v37, %v540_v34  ;;  %v824_v45 = vmax.f32 %v808_v39, 0.0 }
 0x198   : > { %v3180_v17 = vpop.eup %3179  ;;  %2838 = vmatprep.mubr.bf16.mxu1 %v831_v41  ;;  %v795_v20 = vmul.f32 %v3178_v33, %v580_v13  ;;  %v822_v52 = vmax.f32 %v806_v49, 0.0  ;;  %v2816_v19 = vpop.f32.mrb[28].mxu1  ;;  %v3050_v49 = vld [vmem:[%s4117_s6 + $0xc8] ss:$12 sps:$4 sm:$0xff]  }
 0x199   : > { %v3182_v48 = vpop.eup %3181  ;;  %v803_v27 = vadd.f32 %v787_v14, %v647_v43  ;;  %v788_v32 = vmul.f32 %v3180_v17, %v544_v12  ;;  %v679_v4 = vadd.f32 %v2816_v19, %v3527_v54  ;;  %v670_v38 = vpop.f32.mrb[29].mxu1  ;;  %v834_v57 = vpack.c.bf16 %v824_v45, %v823_v36  ;;  %v3025_v36 = vld [vmem:[%s4117_s6 + $0x4] ss:$12 sps:$4 sm:$0xff]  }
 0x19a   : > { %v796_v40 = vmul.f32 %v3182_v48, %v584_v42  ;;  %v671_v55 = vadd.f32 %v670_v38, %v3527_v54  ;;  %v2817_v58 = vpop.f32.mrb[30].mxu1  ;;  %v833_v46 = vpack.c.bf16 %v822_v52, %v821_v50  ;;  %v3023_v48 = vld [vmem:[%s4117_s6] ss:$12 sps:$4 sm:$0xff]   ;;  %v3026_v52 = vld [vmem:[%s4117_s6 + $0x18] ss:$12 sps:$4 sm:$0xff]  }
 0x19b   : > { %v804_v11 = vadd.f32 %v788_v32, %v650_v44  ;;  %v811_v59 = vadd.f32 %v795_v20, %v679_v4  ;;  %v682_v60 = vadd.f32 %v2817_v58, %v3527_v54  ;;  %v673_v62 = vpop.f32.mrb[31].mxu1  ;;  %v819_v47 = vmax.f32 %v803_v27, 0.0  ;;  %v3051_v20 = vld [vmem:[%s4117_s6 + $0x8] ss:$12 sps:$4 sm:$0xff]   ;;  %v3055_v27 = vld [vmem:[%s4117_s6 + $0xe0] ss:$12 sps:$4 sm:$0xff]  }
 0x19c   : > { %v809_v0 = vadd.f32 %v793_v5, %v671_v55  ;;  %v674_v2 = vadd.f32 %v673_v62, %v3527_v54  ;;  %v3028_v32 = vld [vmem:[%s4117_s6 + $0x1c] ss:$12 sps:$4 sm:$0xff]   ;;  %v3056_v50 = vld [vmem:[%s4117_s6 + $0x20] ss:$12 sps:$4 sm:$0xff]   ;;  %v3060_v19 = vld [vmem:[%s4117_s6 + $0xf8] ss:$12 sps:$4 sm:$0xff]  }
 0x19d   : > { %v820_v63 = vmax.f32 %v804_v11, 0.0  ;;  %v812_v3 = vadd.f32 %v796_v40, %v682_v60  ;;  %v827_v51 = vmax.f32 %v811_v59, 0.0  ;;  %v3031_v4 = vld [vmem:[%s4117_s6 + $0x34] ss:$12 sps:$4 sm:$0xff]   ;;  %v3061_v38 = vld [vmem:[%s4117_s6 + $0x38] ss:$12 sps:$4 sm:$0xff]  }
 0x19e   : > { %v810_v10 = vadd.f32 %v794_v16, %v674_v2  ;;  %v825_v56 = vmax.f32 %v809_v0, 0.0  ;;  %v3029_v40 = vld [vmem:[%s4117_s6 + $0x30] ss:$12 sps:$4 sm:$0xff]   ;;  %v3034_v11 = vld [vmem:[%s4117_s6 + $0x4c] ss:$12 sps:$4 sm:$0xff]  }
 0x19f   : > { %v832_v6 = vpack.c.bf16 %v820_v63, %v819_v47  ;;  %v828_v7 = vmax.f32 %v812_v3, 0.0  ;;  %v3066_v55 = vld [vmem:[%s4117_s6 + $0x50] ss:$12 sps:$4 sm:$0xff]   ;;  %v3032_v58 = vld [vmem:[%s4117_s6 + $0x48] ss:$12 sps:$4 sm:$0xff]  }
 0x1a0   : > { %v826_v15 = vmax.f32 %v810_v10, 0.0  ;;  %v3037_v59 = vld [vmem:[%s4117_s6 + $0x64] ss:$12 sps:$4 sm:$0xff]   ;;  %v3071_v60 = vld [vmem:[%s4117_s6 + $0x68] ss:$12 sps:$4 sm:$0xff]  }
 0x1a1   : > { %2839 = vmatmul.mubr.bf16.gmra.mrb[36].mxu1 %v832_v6  ;;  %v836_v18 = vpack.c.bf16 %v828_v7, %v827_v51  ;;  %v3035_v62 = vld [vmem:[%s4117_s6 + $0x60] ss:$12 sps:$4 sm:$0xff]   ;;  %v3040_v63 = vld [vmem:[%s4117_s6 + $0x7c] ss:$12 sps:$4 sm:$0xff]   ;;  %v3038_v2 = vld [vmem:[%s4117_s6 + $0x78] ss:$12 sps:$4 sm:$0xff]  }
 0x1a2   : > { %2842 = vmatprep.mubr.bf16.mxu1 %v833_v46  ;;  %v835_v22 = vpack.c.bf16 %v826_v15, %v825_v56  ;;  %v3070_v46 = vld [vmem:[%s4117_s6 + $0x128] ss:$12 sps:$4 sm:$0xff]   ;;  %v3075_v47 = vld [vmem:[%s4117_s6 + $0x140] ss:$12 sps:$4 sm:$0xff]   ;;  %v3041_v10 = vld [vmem:[%s4117_s6 + $0x90] ss:$12 sps:$4 sm:$0xff]  }
 0x1a3   : > { %v3076_v0 = vld [vmem:[%s4117_s6 + $0x80] ss:$12 sps:$4 sm:$0xff]   ;;  %v3044_v51 = vld [vmem:[%s4117_s6 + $0xa8] ss:$12 sps:$4 sm:$0xff]   ;;  %v3049_v7 = vld [vmem:[%s4117_s6 + $0xc4] ss:$12 sps:$4 sm:$0xff]  }
 0x1a4   : > { %v3043_v3 = vld [vmem:[%s4117_s6 + $0x94] ss:$12 sps:$4 sm:$0xff]   ;;  %v3046_v6 = vld [vmem:[%s4117_s6 + $0xac] ss:$12 sps:$4 sm:$0xff]   ;;  %v3054_v15 = vld [vmem:[%s4117_s6 + $0xdc] ss:$12 sps:$4 sm:$0xff]  }
 0x1a5   : > { %v3047_v56 = vld [vmem:[%s4117_s6 + $0xc0] ss:$12 sps:$4 sm:$0xff]  }
 0x1a9   : > { %2843 = vmatmul.mubr.bf16.gmra.mrb[40].mxu1 %v834_v57  ;;  %v3065_v57 = vld [vmem:[%s4117_s6 + $0x110] ss:$12 sps:$4 sm:$0xff]  }
 0x1aa   : > { %2846 = vmatprep.mubr.bf16.mxu1 %v835_v22  ;;  %v3059_v22 = vld [vmem:[%s4117_s6 + $0xf4] ss:$12 sps:$4 sm:$0xff]  }
 0x1b1   : > { %2847 = vmatmul.mubr.bf16.gmra.mrb[44].mxu1 %v836_v18  ;;  %v3052_v18 = vld [vmem:[%s4117_s6 + $0xd8] ss:$12 sps:$4 sm:$0xff]  }
 0x1b2   : > { %2858 = vmatprep.mubr.msk.bf16.mxu1 %vm3259_vm4, %v3258_v23 }
 0x262   : > { %v2836_v54 = vpop.f32.mrb[32].mxu1 }
 0x263   : > { %v935_v5 = vpop.f32.mrb[33].mxu1 }
 0x264   : > { %v2837_v16 = vpop.f32.mrb[34].mxu1 }
 0x265   : > { %v999_v24 = vpack.c.bf16 %v2837_v16, %v2836_v54  ;;  %v938_v25 = vpop.f32.mrb[35].mxu1  ;;  %v3064_v54 = vld [vmem:[%s4117_s6 + $0x10c] ss:$12 sps:$4 sm:$0xff]   ;;  %v3069_v16 = vld [vmem:[%s4117_s6 + $0x124] ss:$12 sps:$4 sm:$0xff]  }
 0x266   : > { %v998_v26 = vpack.c.bf16 %v938_v25, %v935_v5  ;;  %v3062_v5 = vld [vmem:[%s4117_s6 + $0x108] ss:$12 sps:$4 sm:$0xff]  }
 0x267   : > { %2857 = vmatpush3.bf16.msra.mxu1 %v999_v24  ;;  %v3067_v24 = vld [vmem:[%s4117_s6 + $0x120] ss:$12 sps:$4 sm:$0xff]   ;;  %v3074_v25 = vld [vmem:[%s4117_s6 + $0x13c] ss:$12 sps:$4 sm:$0xff]  }
 0x268   : > { %2851 = vmatpush3.bf16.msra.mxu0 %v998_v26  ;;  %2868 = vmatprep.subr.bf16.mxu1 %v3258_v23  ;;  %v3072_v26 = vld [vmem:[%s4117_s6 + $0x138] ss:$12 sps:$4 sm:$0xff]  }
 0x269   : > { %2862 = vmatprep.subr.bf16.mxu0 %v3258_v23 }
 0x26a   : > { %2859 = vmatmul.mubr.msk.bf16.vlgmr.msra.gmra.mrb[48].mxu1 %vm1013_vm5, %v3022_v28 }
 0x26b   : > { %2853 = vmatmul.mubr.msk.bf16.vlgmr.msra.gmra.mrb[16].mxu0 %vm1013_vm5, %v3022_v28  ;;  %2870 = vmatprep.mubr.msk.bf16.mxu1 %vm3259_vm4, %v3258_v23 }
 0x26c   : > { %2864 = vmatprep.mubr.msk.bf16.mxu0 %vm3259_vm4, %v3258_v23 }
 0x274   : > { %v2840_v61 = vpop.f32.mrb[36].mxu1 }
 0x275   : > { %v951_v29 = vpop.f32.mrb[37].mxu1 }
 0x276   : > { %v2841_v31 = vpop.f32.mrb[38].mxu1 }
 0x277   : > { %v1001_v34 = vpack.c.bf16 %v2841_v31, %v2840_v61  ;;  %v954_v30 = vpop.f32.mrb[39].mxu1  ;;  %v3080_v61 = vld [vmem:[%s4117_s6 + $0x158] ss:$12 sps:$4 sm:$0xff]   ;;  %v3077_v31 = vld [vmem:[%s4117_s6 + $0x150] ss:$12 sps:$4 sm:$0xff]  }
 0x278   : > { %v1000_v35 = vpack.c.bf16 %v954_v30, %v951_v29  ;;  %v3081_v29 = vld [vmem:[%s4117_s6 + $0x98] ss:$12 sps:$4 sm:$0xff]   ;;  %v3085_v30 = vld [vmem:[%s4117_s6 + $0x170] ss:$12 sps:$4 sm:$0xff]  }
 0x279   : > { %2869 = vmatpush3.bf16.msra.mxu1 %v1001_v34  ;;  %v3084_v34 = vld [vmem:[%s4117_s6 + $0x16c] ss:$12 sps:$4 sm:$0xff]  }
 0x27a   : > { %2863 = vmatpush3.bf16.msra.mxu0 %v1000_v35  ;;  %2880 = vmatprep.subr.bf16.mxu1 %v3258_v23  ;;  %v3086_v35 = vld [vmem:[%s4117_s6 + $0xb0] ss:$12 sps:$4 sm:$0xff]  }
 0x27b   : > { %2874 = vmatprep.subr.bf16.mxu0 %v3258_v23 }
 0x27c   : > { %v2844_v37 = vpop.f32.mrb[40].mxu1  ;;  %2871 = vmatmul.mubr.msk.bf16.vlgmr.msra.gmra.mrb[52].mxu1 %vm1013_vm5, %v3022_v28 }
 0x27d   : > { %v967_v13 = vpop.f32.mrb[41].mxu1  ;;  %2865 = vmatmul.mubr.msk.bf16.vlgmr.msra.gmra.mrb[20].mxu0 %vm1013_vm5, %v3022_v28  ;;  %2882 = vmatprep.mubr.msk.bf16.mxu1 %vm3259_vm4, %v3258_v23 }
 0x27e   : > { %v2845_v12 = vpop.f32.mrb[42].mxu1  ;;  %2876 = vmatprep.mubr.msk.bf16.mxu0 %vm3259_vm4, %v3258_v23 }
 0x27f   : > { %v1003_v39 = vpack.c.bf16 %v2845_v12, %v2844_v37  ;;  %v970_v41 = vpop.f32.mrb[43].mxu1  ;;  %v3082_v37 = vld [vmem:[%s4117_s6 + $0x168] ss:$12 sps:$4 sm:$0xff]  }
 0x280   : > { %v1002_v33 = vpack.c.bf16 %v970_v41, %v967_v13  ;;  %v3089_v13 = vld [vmem:[%s4117_s6 + $0x184] ss:$12 sps:$4 sm:$0xff]   ;;  %v3090_v12 = vld [vmem:[%s4117_s6 + $0x188] ss:$12 sps:$4 sm:$0xff]  }
 0x281   : > { %2881 = vmatpush3.bf16.msra.mxu1 %v1003_v39  ;;  %v3745_v39 = vld [vmem:[%s4116_s5] ss:$0 sm:$0xff] }
 0x282   : > { %2875 = vmatpush3.bf16.msra.mxu0 %v1002_v33  ;;  %2892 = vmatprep.subr.bf16.mxu1 %v3258_v23 }
 0x283   : > { %2886 = vmatprep.subr.bf16.mxu0 %v3258_v23 }
 0x284   : > { %v2848_v42 = vpop.f32.mrb[44].mxu1  ;;  %2883 = vmatmul.mubr.msk.bf16.vlgmr.msra.gmra.mrb[56].mxu1 %vm1013_vm5, %v3022_v28 }
 0x285   : > { %v983_v43 = vpop.f32.mrb[45].mxu1  ;;  %2877 = vmatmul.mubr.msk.bf16.vlgmr.msra.gmra.mrb[24].mxu0 %vm1013_vm5, %v3022_v28  ;;  %2894 = vmatprep.mubr.msk.bf16.mxu1 %vm3259_vm4, %v3258_v23 }
 0x286   : > { %v2849_v14 = vpop.f32.mrb[46].mxu1  ;;  %2888 = vmatprep.mubr.msk.bf16.mxu0 %vm3259_vm4, %v3258_v23  ;;  %v3057_v23 = vld [vmem:[%s4117_s6 + $0xf0] ss:$12 sps:$4 sm:$0xff]  }
 0x287   : > { %v1005_v17 = vpack.c.bf16 %v2849_v14, %v2848_v42  ;;  %v986_v44 = vpop.f32.mrb[47].mxu1 }
 0x288   : > { %v1004_v45 = vpack.c.bf16 %v986_v44, %v983_v43 }
 0x289   : > { %2893 = vmatpush3.bf16.msra.mxu1 %v1005_v17 }
 0x28a   : > { %2887 = vmatpush3.bf16.msra.mxu0 %v1004_v45  ;;  %2720 = vmatprep.subr.bf16.mxu1 %v3050_v49 }
 0x28b   : > { %1889 = vmatprep.subr.bf16.mxu0 %v3025_v36 }
 0x28c   : > { %2895 = vmatmul.mubr.msk.bf16.vlgmr.msra.gmra.mrb[60].mxu1 %vm1013_vm5, %v3022_v28 }
 0x28d   : > { %2889 = vmatmul.mubr.msk.bf16.vlgmr.msra.gmra.mrb[28].mxu0 %vm1013_vm5, %v3022_v28  ;;  %2721 = vmatpush3.bf16.msra.mxu1 %v3051_v20  ;;  %v3079_v28 = vld [vmem:[%s4117_s6 + $0x154] ss:$12 sps:$4 sm:$0xff]  }
 0x28e   : > { %1890 = vmatpush1.bf16.msra.mxu0 %v3023_v48  ;;  %2722 = vmatprep.subr.bf16.mxu1 %v3055_v27 }
 0x28f   : > { %1891 = vmatprep.subr.bf16.mxu0 %v3028_v32 }
 0x291   : > { %2723 = vmatpush3.bf16.msra.mxu1 %v3056_v50 }
 0x292   : > { %1892 = vmatpush1.bf16.msra.mxu0 %v3026_v52  ;;  %2724 = vmatprep.subr.bf16.mxu1 %v3060_v19 }
 0x293   : > { %1893 = vmatprep.subr.bf16.mxu0 %v3031_v4 }
 0x295   : > { %2725 = vmatpush3.bf16.msra.mxu1 %v3061_v38  ;;  %v3087_v38 = vld [vmem:[%s4117_s6 + $0x180] ss:$12 sps:$4 sm:$0xff]  }
 0x296   : > { %1894 = vmatpush1.bf16.msra.mxu0 %v3029_v40  ;;  %2726 = vmatprep.subr.bf16.mxu1 %v3065_v57  ;;  %v3093_v40 = vld [vmem:[%s4117_s6 + $0x19c] ss:$12 sps:$4 sm:$0xff]   ;;  %v3094_v57 = vld [vmem:[%s4117_s6 + $0x1a0] ss:$12 sps:$4 sm:$0xff]  }
 0x297   : > { %1895 = vmatprep.subr.bf16.mxu0 %v3034_v11  ;;  %v3091_v11 = vld [vmem:[%s4117_s6 + $0x198] ss:$12 sps:$4 sm:$0xff]  }
 0x299   : > { %2727 = vmatpush3.bf16.msra.mxu1 %v3066_v55  ;;  %v3097_v55 = vld [vmem:[%s4117_s6 + $0x1b4] ss:$12 sps:$4 sm:$0xff]  }
 0x29a   : > { %1896 = vmatpush1.bf16.msra.mxu0 %v3032_v58  ;;  %2728 = vmatprep.subr.bf16.mxu1 %v3070_v46  ;;  %v3098_v58 = vld [vmem:[%s4117_s6 + $0x1b8] ss:$12 sps:$4 sm:$0xff]  }
 0x29b   : > { %1897 = vmatprep.subr.bf16.mxu0 %v3037_v59  ;;  %v3095_v59 = vld [vmem:[%s4117_s6 + $0x1b0] ss:$12 sps:$4 sm:$0xff]  }
 0x29d   : > { %2729 = vmatpush3.bf16.msra.mxu1 %v3071_v60 }
 0x29e   : > { %1898 = vmatpush1.bf16.msra.mxu0 %v3035_v62  ;;  %2730 = vmatprep.subr.bf16.mxu1 %v3075_v47 }
 0x29f   : > { %1899 = vmatprep.subr.bf16.mxu0 %v3040_v63  ;;  %v3101_v63 = vld [vmem:[%s4117_s6 + $0x1cc] ss:$12 sps:$4 sm:$0xff]  }
 0x2a1   : > { %2731 = vmatpush3.bf16.msra.mxu1 %v3076_v0  ;;  %v3102_v0 = vld [vmem:[%s4117_s6 + $0x1d0] ss:$12 sps:$4 sm:$0xff]  }
 0x2a2   : > { %1900 = vmatpush1.bf16.msra.mxu0 %v3038_v2  ;;  %2732 = vmatprep.subr.bf16.mxu1 %v3080_v61 }
 0x2a3   : > { %1901 = vmatprep.subr.bf16.mxu0 %v3043_v3 }
 0x2a5   : > { %2733 = vmatpush3.bf16.msra.mxu1 %v3081_v29 }
 0x2a6   : > { %1902 = vmatpush1.bf16.msra.mxu0 %v3041_v10  ;;  %2734 = vmatprep.subr.bf16.mxu1 %v3085_v30 }
 0x2a7   : > { %1903 = vmatprep.subr.bf16.mxu0 %v3046_v6 }
 0x2a9   : > { %2735 = vmatpush3.bf16.msra.mxu1 %v3086_v35 }
 0x2aa   : > { %1904 = vmatpush1.bf16.msra.mxu0 %v3044_v51  ;;  %2898 = vmatprep.subr.bf16.mxu1 %v3090_v12 }
 0x2ab   : > { %1905 = vmatprep.subr.bf16.mxu0 %v3049_v7 }
 0x2ae   : > { %1906 = vmatpush1.bf16.msra.mxu0 %v3047_v56 }
 0x2af   : > { %1907 = vmatprep.subr.bf16.mxu0 %v3054_v15 }
 0x2b2   : > { %1908 = vmatpush1.bf16.msra.mxu0 %v3052_v18 }
 0x2b3   : > { %1909 = vmatprep.subr.bf16.mxu0 %v3059_v22  ;;  %v3099_v22 = vld [vmem:[%s4117_s6 + $0x1c8] ss:$12 sps:$4 sm:$0xff]  }
 0x2b6   : > { %1910 = vmatpush1.bf16.msra.mxu0 %v3057_v23 }
 0x2b7   : > { %1911 = vmatprep.subr.bf16.mxu0 %v3064_v54  ;;  %v3105_v54 = vld [vmem:[%s4117_s6 + $0x1e4] ss:$12 sps:$4 sm:$0xff]  }
 0x2ba   : > { %1912 = vmatpush1.bf16.msra.mxu0 %v3062_v5  ;;  %v3106_v5 = vld [vmem:[%s4117_s6 + $0x1e8] ss:$12 sps:$4 sm:$0xff]  }
 0x2bb   : > { %1913 = vmatprep.subr.bf16.mxu0 %v3069_v16 }
 0x2be   : > { %1914 = vmatpush1.bf16.msra.mxu0 %v3067_v24 }
 0x2bf   : > { %1915 = vmatprep.subr.bf16.mxu0 %v3074_v25 }
 0x2c2   : > { %1916 = vmatpush1.bf16.msra.mxu0 %v3072_v26 }
 0x2c3   : > { %1917 = vmatprep.subr.bf16.mxu0 %v3079_v28 }
 0x2c6   : > { %1918 = vmatpush1.bf16.msra.mxu0 %v3077_v31 }
 0x2c7   : > { %1919 = vmatprep.subr.bf16.mxu0 %v3084_v34  ;;  %v3103_v34 = vld [vmem:[%s4117_s6 + $0x1e0] ss:$12 sps:$4 sm:$0xff]  }
 0x2ca   : > { %1920 = vmatpush1.bf16.msra.mxu0 %v3082_v37 }
 0x2cb   : > { %2002 = vmatprep.subr.bf16.mxu0 %v3089_v13  ;;  %v3109_v13 = vld [vmem:[%s4117_s6 + $0x1fc] ss:$12 sps:$4 sm:$0xff]  }
 0x33d   : > { %v1092_v41 = vpop.f32.mrb[48].mxu1 }
 0x33e   : > { %v1051_v33 = vpop.f32.mrb[16].mxu0  ;;  %v1354_v42 = vadd.f32 %v3745_v39, %v1092_v41  ;;  %v2860_v43 = vpop.f32.mrb[49].mxu1 }
 0x33f   : > { %v1352_v14 = vadd.f32 %v3745_v39, %v1051_v33  ;;  %v2854_v49 = vpop.f32.mrb[17].mxu0  ;;  %v1095_v17 = vpop.f32.mrb[50].mxu1 }
 0x340   : > { %v1054_v44 = vpop.f32.mrb[18].mxu0  ;;  %v1370_v36 = vmax.f32 %v1354_v42, 0.0  ;;  %v1355_v45 = vadd.f32 %v3745_v39, %v1095_v17  ;;  %v2861_v20 = vpop.f32.mrb[51].mxu1 }
 0x341   : > { %v1353_v48 = vadd.f32 %v3745_v39, %v1054_v44  ;;  %v2855_v27 = vpop.f32.mrb[19].mxu0  ;;  %v1368_v50 = vmax.f32 %v1352_v14, 0.0  ;;  %v3113_v20 = vld [vmem:[%s4117_s6 + $0x214] ss:$12 sps:$4 sm:$0xff]  }
 0x342   : > { %v1371_v32 = vmax.f32 %v1355_v45, 0.0 }
 0x343   : > { %v1369_v52 = vmax.f32 %v1353_v48, 0.0  ;;  %v3114_v48 = vld [vmem:[%s4117_s6 + $0x218] ss:$12 sps:$4 sm:$0xff]  }
 0x344   : > { %v3751_v19 = vpack.c.bf16 %v1371_v32, %v1370_v36  ;;  %v3107_v36 = vld [vmem:[%s4117_s6 + $0x1f8] ss:$12 sps:$4 sm:$0xff]  }
 0x345   : > { %v1384_v4 = vpack.c.bf16 %v1369_v52, %v1368_v50 }
 0x347   : > { %1921 = vmatprep.mubr.bf16.mxu0 %v1384_v4  ;;  %2147 = vmatprep.mubr.bf16.mxu1 %v1384_v4 }
 0x348   : > { %1922 = vmatmul.mubr.bf16.vlgmr.msra.gmra.mrb[32].mxu0 %v3255_v1  ;;  %2148 = vmatmul.mubr.bf16.vlgmr.msra.gmra.mrb[64].mxu1 %v3255_v1 }
 0x349   : > { %1931 = vmatprep.mubr.bf16.mxu0 %v3751_v19  ;;  %2155 = vmatprep.mubr.bf16.mxu1 %v3751_v19 }
 0x34a   : > { %2003 = vmatpush1.bf16.msra.mxu0 %v3087_v38  ;;  %2899 = vmatpush3.bf16.msra.mxu1 %v3090_v12  ;;  %v3110_v12 = vld [vmem:[%s4117_s6 + $0x200] ss:$12 sps:$4 sm:$0xff]  }
 0x34b   : > { %2004 = vmatprep.subr.bf16.mxu0 %v3093_v40  ;;  %2900 = vmatprep.subr.bf16.mxu1 %v3094_v57  ;;  %v3111_v40 = vld [vmem:[%s4117_s6 + $0x210] ss:$12 sps:$4 sm:$0xff]  }
 0x34e   : > { %2005 = vmatpush1.bf16.msra.mxu0 %v3091_v11  ;;  %2901 = vmatpush3.bf16.msra.mxu1 %v3094_v57 }
 0x34f   : > { %v1174_v46 = vpop.f32.mrb[52].mxu1  ;;  %2006 = vmatprep.subr.bf16.mxu0 %v3097_v55  ;;  %2902 = vmatprep.subr.bf16.mxu1 %v3098_v58 }
 0x350   : > { %v1133_v60 = vpop.f32.mrb[20].mxu0  ;;  %v1358_v62 = vadd.f32 %v3745_v39, %v1174_v46  ;;  %v2872_v47 = vpop.f32.mrb[53].mxu1  ;;  %1932 = vmatmul.mubr.bf16.gmra.mrb[36].mxu0 %v1384_v4  ;;  %2156 = vmatmul.mubr.bf16.gmra.mrb[68].mxu1 %v1384_v4  ;;  %v3118_v46 = vld [vmem:[%s4117_s6 + $0x230] ss:$12 sps:$4 sm:$0xff]  }
 0x351   : > { %v1356_v2 = vadd.f32 %v3745_v39, %v1133_v60  ;;  %v2866_v3 = vpop.f32.mrb[21].mxu0  ;;  %v1177_v10 = vpop.f32.mrb[54].mxu1 }
 0x352   : > { %v1136_v6 = vpop.f32.mrb[22].mxu0  ;;  %v1374_v51 = vmax.f32 %v1358_v62, 0.0  ;;  %v1359_v7 = vadd.f32 %v3745_v39, %v1177_v10  ;;  %v2873_v56 = vpop.f32.mrb[55].mxu1  ;;  %2007 = vmatpush1.bf16.msra.mxu0 %v3095_v59  ;;  %2903 = vmatpush3.bf16.msra.mxu1 %v3098_v58  ;;  %v3117_v58 = vld [vmem:[%s4117_s6 + $0x22c] ss:$12 sps:$4 sm:$0xff]  }
 0x353   : > { %v1357_v15 = vadd.f32 %v3745_v39, %v1136_v6  ;;  %v2867_v18 = vpop.f32.mrb[23].mxu0  ;;  %2008 = vmatprep.subr.bf16.mxu0 %v3101_v63  ;;  %2904 = vmatprep.subr.bf16.mxu1 %v3102_v0  ;;  %v1372_v16 = vmax.f32 %v1356_v2, 0.0  ;;  %v3115_v10 = vld [vmem:[%s4117_s6 + $0x228] ss:$12 sps:$4 sm:$0xff]  }
 0x354   : > { %v1375_v23 = vmax.f32 %v1359_v7, 0.0 }
 0x355   : > { %v1373_v24 = vmax.f32 %v1357_v15, 0.0 }
 0x356   : > { %v3797_v25 = vpack.c.bf16 %v1375_v23, %v1374_v51  ;;  %2009 = vmatpush1.bf16.msra.mxu0 %v3099_v22  ;;  %2905 = vmatpush3.bf16.msra.mxu1 %v3102_v0 }
 0x357   : > { %v3799_v26 = vpack.c.bf16 %v1373_v24, %v1372_v16  ;;  %v1256_v28 = vpop.f32.mrb[56].mxu1  ;;  %2010 = vmatprep.subr.bf16.mxu0 %v3105_v54  ;;  %2906 = vmatprep.subr.bf16.mxu1 %v3106_v5 }
 0x358   : > { %v1215_v61 = vpop.f32.mrb[24].mxu0  ;;  %v1362_v29 = vadd.f32 %v3745_v39, %v1256_v28  ;;  %v2884_v31 = vpop.f32.mrb[57].mxu1 }
 0x359   : > { %1941 = vmatprep.mubr.bf16.mxu0 %v3799_v26  ;;  %2163 = vmatprep.mubr.bf16.mxu1 %v3799_v26  ;;  %v1360_v30 = vadd.f32 %v3745_v39, %v1215_v61  ;;  %v2878_v35 = vpop.f32.mrb[25].mxu0  ;;  %v1259_v37 = vpop.f32.mrb[58].mxu1 }
 0x35a   : > { %1942 = vmatmul.mubr.bf16.gmra.mrb[40].mxu0 %v3751_v19  ;;  %2164 = vmatmul.mubr.bf16.gmra.mrb[72].mxu1 %v3751_v19  ;;  %v1218_v41 = vpop.f32.mrb[26].mxu0  ;;  %v1378_v33 = vmax.f32 %v1362_v29, 0.0  ;;  %v1363_v42 = vadd.f32 %v3745_v39, %v1259_v37  ;;  %v2885_v43 = vpop.f32.mrb[59].mxu1 }
 0x35b   : > { %v1376_v14 = vmax.f32 %v1360_v30, 0.0  ;;  %1951 = vmatprep.mubr.bf16.mxu0 %v3797_v25  ;;  %2171 = vmatprep.mubr.bf16.mxu1 %v3797_v25  ;;  %v1361_v49 = vadd.f32 %v3745_v39, %v1218_v41  ;;  %v2879_v17 = vpop.f32.mrb[27].mxu0 }
 0x35c   : > { %v1379_v44 = vmax.f32 %v1363_v42, 0.0  ;;  %2011 = vmatpush1.bf16.msra.mxu0 %v3103_v34  ;;  %2907 = vmatpush3.bf16.msra.mxu1 %v3106_v5 }
 0x35d   : > { %v1377_v45 = vmax.f32 %v1361_v49, 0.0  ;;  %2012 = vmatprep.subr.bf16.mxu0 %v3109_v13  ;;  %2908 = vmatprep.subr.bf16.mxu1 %v3110_v12 }
 0x35e   : > { %v3829_v27 = vpack.c.bf16 %v1379_v44, %v1378_v33 }
 0x35f   : > { %v3831_v32 = vpack.c.bf16 %v1377_v45, %v1376_v14  ;;  %v1338_v50 = vpop.f32.mrb[60].mxu1 }
 0x360   : > { %v1297_v52 = vpop.f32.mrb[28].mxu0  ;;  %v1366_v4 = vadd.f32 %v3745_v39, %v1338_v50  ;;  %v2896_v38 = vpop.f32.mrb[61].mxu1  ;;  %2013 = vmatpush1.bf16.msra.mxu0 %v3107_v36  ;;  %2909 = vmatpush3.bf16.msra.mxu1 %v3110_v12 }
 0x361   : > { %v1364_v57 = vadd.f32 %v3745_v39, %v1297_v52  ;;  %v2890_v11 = vpop.f32.mrb[29].mxu0  ;;  %v1341_v55 = vpop.f32.mrb[62].mxu1  ;;  %2014 = vmatprep.subr.bf16.mxu0 %v3113_v20  ;;  %2910 = vmatprep.subr.bf16.mxu1 %v3114_v48 }
 0x362   : > { %1952 = vmatmul.mubr.bf16.gmra.mrb[44].mxu0 %v3799_v26  ;;  %2172 = vmatmul.mubr.bf16.gmra.mrb[76].mxu1 %v3799_v26  ;;  %v1300_v59 = vpop.f32.mrb[30].mxu0  ;;  %v1382_v60 = vmax.f32 %v1366_v4, 0.0  ;;  %v1367_v62 = vadd.f32 %v3745_v39, %v1341_v55  ;;  %v2897_v47 = vpop.f32.mrb[63].mxu1 }
 0x363   : > { %1961 = vmatprep.mubr.bf16.mxu0 %v3831_v32  ;;  %2179 = vmatprep.mubr.bf16.mxu1 %v3831_v32  ;;  %v1380_v63 = vmax.f32 %v1364_v57, 0.0  ;;  %v1365_v0 = vadd.f32 %v3745_v39, %v1300_v59  ;;  %v2891_v2 = vpop.f32.mrb[31].mxu0  ;;  %v3896_v57 = vld [vmem:[%s4118_s7] sm:$0x7] }
 0x364   : > { %v1383_v3 = vmax.f32 %v1367_v62, 0.0  ;;  %2015 = vmatpush1.bf16.msra.mxu0 %v3111_v40  ;;  %2911 = vmatpush3.bf16.msra.mxu1 %v3114_v48  ;;  %v3903_v59 = vrot.slane %v3896_v57, %v430_v21  ;;  %v3910_v62 = vrot.slane %v3896_v57, %v426_v9 }
 0x365   : > { %v1381_v6 = vmax.f32 %v1365_v0, 0.0  ;;  %2016 = vmatprep.subr.bf16.mxu0 %v3117_v58  ;;  %2912 = vmatprep.subr.bf16.mxu1 %v3118_v46 }
 0x366   : > { %v1391_v51 = vpack.c.bf16 %v1383_v3, %v1382_v60 }
 0x367   : > { %v1390_v7 = vpack.c.bf16 %v1381_v6, %v1380_v63 }
 0x368   : > { %2017 = vmatpush1.bf16.msra.mxu0 %v3115_v10  ;;  %2913 = vmatpush3.bf16.msra.mxu1 %v3118_v46 }
 0x36a   : > { %1962 = vmatmul.mubr.bf16.gmra.mrb[48].mxu0 %v3797_v25  ;;  %2180 = vmatmul.mubr.bf16.gmra.mrb[80].mxu1 %v3797_v25 }
 0x36b   : > { %1971 = vmatprep.mubr.bf16.mxu0 %v3829_v27  ;;  %2187 = vmatprep.mubr.bf16.mxu1 %v3829_v27 }
 0x372   : > { %1972 = vmatmul.mubr.bf16.gmra.mrb[52].mxu0 %v3831_v32  ;;  %2188 = vmatmul.mubr.bf16.gmra.mrb[84].mxu1 %v3831_v32 }
 0x373   : > { %1981 = vmatprep.mubr.bf16.mxu0 %v1390_v7  ;;  %2195 = vmatprep.mubr.bf16.mxu1 %v1390_v7 }
 0x37a   : > { %1982 = vmatmul.mubr.bf16.gmra.mrb[56].mxu0 %v3829_v27  ;;  %2196 = vmatmul.mubr.bf16.gmra.mrb[88].mxu1 %v3829_v27 }
 0x37b   : > { %1991 = vmatprep.mubr.bf16.mxu0 %v1391_v51  ;;  %2203 = vmatprep.mubr.bf16.mxu1 %v1391_v51 }
 0x382   : > { %1992 = vmatmul.mubr.bf16.gmra.mrb[60].mxu0 %v1390_v7  ;;  %2204 = vmatmul.mubr.bf16.gmra.mrb[92].mxu1 %v1390_v7 }
 0x383   : > { %2914 = vmatprep.mubr.bf16.mxu1 %v3751_v19  ;;  %2034 = vmatprep.mubr.bf16.mxu0 %v3255_v1 }
 0x38a   : > { %2035 = vmatmul.mubr.bf16.vlgmr.msra.gmra.mrb[32].mxu0 %v3751_v19  ;;  %2915 = vmatmul.mubr.bf16.vlgmr.msra.gmra.mrb[96].mxu1 %v3799_v26 }
 0x38b   : > { %2918 = vmatprep.mubr.bf16.mxu1 %v3797_v25  ;;  %2044 = vmatprep.mubr.bf16.mxu0 %v3255_v1 }
 0x392   : > { %2045 = vmatmul.mubr.bf16.gmra.mrb[36].mxu0 %v3799_v26  ;;  %2919 = vmatmul.mubr.bf16.gmra.mrb[100].mxu1 %v3831_v32 }
 0x393   : > { %2922 = vmatprep.mubr.bf16.mxu1 %v3829_v27  ;;  %2054 = vmatprep.mubr.bf16.mxu0 %v3255_v1 }
 0x39a   : > { %2055 = vmatmul.mubr.bf16.gmra.mrb[40].mxu0 %v3797_v25  ;;  %2923 = vmatmul.mubr.bf16.gmra.mrb[104].mxu1 %v1390_v7 }
 0x39b   : > { %2926 = vmatprep.mubr.bf16.mxu1 %v1391_v51  ;;  %2064 = vmatprep.mubr.bf16.mxu0 %v3255_v1 }
 0x3a2   : > { %2065 = vmatmul.mubr.bf16.gmra.mrb[44].mxu0 %v3831_v32  ;;  %2927 = vmatmul.mubr.bf16.gmra.mrb[108].mxu1 %v3255_v1 }
 0x3a3   : > { %2074 = vmatprep.mubr.bf16.mxu0 %v3255_v1 }
 0x3aa   : > { %2075 = vmatmul.mubr.bf16.gmra.mrb[48].mxu0 %v3829_v27 }
 0x3ab   : > { %2084 = vmatprep.mubr.bf16.mxu0 %v3255_v1 }
 0x3b2   : > { %2085 = vmatmul.mubr.bf16.gmra.mrb[52].mxu0 %v1390_v7 }
 0x3b3   : > { %2094 = vmatprep.mubr.bf16.mxu0 %v3255_v1 }
 0x3ba   : > { %2095 = vmatmul.mubr.bf16.gmra.mrb[56].mxu0 %v1391_v51 }
 0x3bb   : > { %2104 = vmatprep.mubr.bf16.mxu0 %v3255_v1 }
 0x3c2   : > { %2105 = vmatmul.mubr.bf16.gmra.mrb[60].mxu0 %v3255_v1 }
 0x41b   : > { %v2736_v39 = vpop.f32.mrb[64].mxu1 }
 0x41c   : > { %v2737_v19 = vpop.f32.mrb[65].mxu1 }
 0x41d   : > { %v2738_v56 = vadd.f32 %v2737_v19, %v2736_v39  ;;  %v2739_v15 = vpop.f32.mrb[66].mxu1 }
 0x41e   : > { %v2740_v18 = vpop.f32.mrb[67].mxu1 }
 0x41f   : > { %v2741_v22 = vadd.f32 %v2740_v18, %v2739_v15  ;;  %v2150_v47 = vadd.f32 %v2738_v56, %v3903_v59 }
 0x421   : > { %v2153_v19 = vadd.f32 %v2741_v22, %v3903_v59 }
 0x423   : > { %v2742_v23 = vpop.f32.mrb[68].mxu1 }
 0x424   : > { %v2743_v54 = vpop.f32.mrb[69].mxu1 }
 0x425   : > { %v2744_v5 = vadd.f32 %v2743_v54, %v2742_v23  ;;  %v2745_v16 = vpop.f32.mrb[70].mxu1 }
 0x426   : > { %v2746_v24 = vpop.f32.mrb[71].mxu1 }
 0x427   : > { %v2747_v25 = vadd.f32 %v2746_v24, %v2745_v16  ;;  %v2158_v63 = vadd.f32 %v2744_v5, %v3903_v59 }
 0x429   : > { %v2161_v21 = vadd.f32 %v2747_v25, %v3903_v59 }
 0x42d   : > { %v2748_v26 = vpop.f32.mrb[72].mxu1 }
 0x42e   : > { %v2749_v28 = vpop.f32.mrb[73].mxu1 }
 0x42f   : > { %v2750_v61 = vadd.f32 %v2749_v28, %v2748_v26  ;;  %v2751_v29 = vpop.f32.mrb[74].mxu1 }
 0x430   : > { %v2752_v31 = vpop.f32.mrb[75].mxu1 }
 0x431   : > { %v3881_v34 = vadd.f32 %v2752_v31, %v2751_v29  ;;  %v2166_v28 = vadd.f32 %v2750_v61, %v3903_v59 }
 0x435   : > { %v2754_v1 = vpop.f32.mrb[76].mxu1 }
 0x436   : > { %v2755_v30 = vpop.f32.mrb[77].mxu1 }
 0x437   : > { %v2756_v35 = vadd.f32 %v2755_v30, %v2754_v1  ;;  %v2757_v37 = vpop.f32.mrb[78].mxu1 }
 0x438   : > { %v2758_v13 = vpop.f32.mrb[79].mxu1 }
 0x439   : > { %v2759_v12 = vadd.f32 %v2758_v13, %v2757_v37  ;;  %v2174_v24 = vadd.f32 %v2756_v35, %v3903_v59  ;;  %v2169_v35 = vadd.f32 %v3881_v34, %v3903_v59 }
 0x43b   : > { %v2177_v1 = vadd.f32 %v2759_v12, %v3903_v59 }
 0x43d   : > { %v2760_v41 = vpop.f32.mrb[80].mxu1 }
 0x43e   : > { %v2761_v33 = vpop.f32.mrb[81].mxu1 }
 0x43f   : > { %v3883_v42 = vadd.f32 %v2761_v33, %v2760_v41  ;;  %v2763_v43 = vpop.f32.mrb[82].mxu1 }
 0x440   : > { %v2764_v14 = vpop.f32.mrb[83].mxu1 }
 0x441   : > { %v3885_v49 = vadd.f32 %v2764_v14, %v2763_v43  ;;  %v2182_v34 = vadd.f32 %v3883_v42, %v3903_v59 }
 0x445   : > { %v2766_v17 = vpop.f32.mrb[84].mxu1 }
 0x446   : > { %v2767_v44 = vpop.f32.mrb[85].mxu1 }
 0x447   : > { %v2768_v36 = vadd.f32 %v2767_v44, %v2766_v17  ;;  %v2769_v45 = vpop.f32.mrb[86].mxu1 }
 0x448   : > { %v2770_v20 = vpop.f32.mrb[87].mxu1 }
 0x449   : > { %v3887_v48 = vadd.f32 %v2770_v20, %v2769_v45  ;;  %v2190_v45 = vadd.f32 %v2768_v36, %v3903_v59 }
 0x44d   : > { %v2772_v27 = vpop.f32.mrb[88].mxu1 }
 0x44e   : > { %v2773_v32 = vpop.f32.mrb[89].mxu1 }
 0x44f   : > { %v3889_v50 = vadd.f32 %v2773_v32, %v2772_v27  ;;  %v2775_v52 = vpop.f32.mrb[90].mxu1 }
 0x450   : > { %v2776_v4 = vpop.f32.mrb[91].mxu1 }
 0x451   : > { %v3891_v38 = vadd.f32 %v2776_v4, %v2775_v52 }
 0x455   : > { %v2778_v40 = vpop.f32.mrb[92].mxu1 }
 0x456   : > { %v2779_v11 = vpop.f32.mrb[93].mxu1 }
 0x457   : > { %v3898_v55 = vadd.f32 %v2779_v11, %v2778_v40  ;;  %v2781_v58 = vpop.f32.mrb[94].mxu1 }
 0x458   : > { %v2782_v46 = vpop.f32.mrb[95].mxu1 }
 0x459   : > { %v3905_v60 = vadd.f32 %v2782_v46, %v2781_v58  ;;  %v2193_v58 = vadd.f32 %v3887_v48, %v3903_v59 }
 0x45d   : > { %v3914_v0 = vpop.f32.mrb[32].mxu0  ;;  %v2916_v2 = vpop.f32.mrb[96].mxu1 }
 0x45e   : > { %v3916_v3 = vadd.f32 %v2916_v2, %v2158_v63  ;;  %v2038_v10 = vpop.f32.mrb[33].mxu0  ;;  %v2246_v6 = vpop.f32.mrb[97].mxu1 }
 0x45f   : > { %v2933_v51 = vadd.f32 %v2038_v10, %v3910_v62  ;;  %v3920_v7 = vadd.f32 %v2246_v6, %v2150_v47  ;;  %v3922_v39 = vpop.f32.mrb[34].mxu0  ;;  %v2917_v9 = vpop.f32.mrb[98].mxu1  ;;  %v2185_v10 = vadd.f32 %v3885_v49, %v3903_v59  ;;  %v3975_v49 = vrot.slane %v3896_v57, %v422_v53 }
 0x460   : > { %v3925_v56 = vadd.f32 %v2917_v9, %v2161_v21  ;;  %v2042_v15 = vpop.f32.mrb[35].mxu0  ;;  %v2249_v18 = vpop.f32.mrb[99].mxu1 }
 0x461   : > { %v2659_v23 = vmul.f32 -1.442695, %v2933_v51  ;;  %v2935_v54 = vadd.f32 %v2042_v15, %v3910_v62  ;;  %v3928_v5 = vadd.f32 %v2249_v18, %v2153_v19  ;;  %v2206_v18 = vadd.f32 %v3898_v55, %v3903_v59 }
 0x462   : > { %v2209_v55 = vadd.f32 %v3905_v60, %v3903_v59  ;;  %v2932_v60 = vadd.f32 %v3914_v0, %v3975_v49 }
 0x463   : > { %3183 = vpow2.f32 %v2659_v23  ;;  %v2660_v16 = vmul.f32 -1.442695, %v2935_v54 }
 0x465   : > { %3185 = vpow2.f32 %v2660_v16  ;;  %v3931_v25 = vpop.f32.mrb[36].mxu0  ;;  %v2920_v26 = vpop.f32.mrb[100].mxu1 }
 0x466   : > { %v3934_v22 = vadd.f32 %v2920_v26, %v2174_v24  ;;  %v2048_v29 = vpop.f32.mrb[37].mxu0  ;;  %v2262_v31 = vpop.f32.mrb[101].mxu1  ;;  %v2198_v24 = vadd.f32 %v3889_v50, %v3903_v59 }
 0x467   : > { %v2937_v30 = vadd.f32 %v2048_v29, %v3910_v62  ;;  %v3938_v37 = vadd.f32 %v2262_v31, %v2166_v28  ;;  %v3940_v13 = vpop.f32.mrb[38].mxu0  ;;  %v2921_v41 = vpop.f32.mrb[102].mxu1 }
 0x468   : > { %v3944_v33 = vadd.f32 %v2921_v41, %v2177_v1  ;;  %v2052_v43 = vpop.f32.mrb[39].mxu0  ;;  %v2265_v61 = vpop.f32.mrb[103].mxu1  ;;  %v2201_v41 = vadd.f32 %v3891_v38, %v3903_v59  ;;  %v2934_v38 = vadd.f32 %v3922_v39, %v3975_v49 }
 0x469   : > { %v2661_v14 = vmul.f32 -1.442695, %v2937_v30  ;;  %v2939_v17 = vadd.f32 %v2052_v43, %v3910_v62  ;;  %v3947_v44 = vadd.f32 %v2265_v61, %v2169_v35 }
 0x46b   : > { %3187 = vpow2.f32 %v2661_v14  ;;  %v2662_v12 = vmul.f32 -1.442695, %v2939_v17 }
 0x46d   : > { %v3184_v20 = vpop.eup %3183  ;;  %3189 = vpow2.f32 %v2662_v12  ;;  %v3950_v27 = vpop.f32.mrb[40].mxu0 }
 0x46e   : > { %v2924_v32 = vpop.f32.mrb[104].mxu1  ;;  %v2357_v52 = vadd.f32 1.0, %v3184_v20  ;;  %v2058_v40 = vpop.f32.mrb[41].mxu0 }
 0x46f   : > { %v3954_v4 = vadd.f32 %v2924_v32, %v2190_v45  ;;  %v2278_v11 = vpop.f32.mrb[105].mxu1  ;;  %v3186_v46 = vpop.eup %3185  ;;  %v2941_v47 = vadd.f32 %v2058_v40, %v3910_v62 }
 0x470   : > { %v3959_v36 = vadd.f32 %v2278_v11, %v2182_v34  ;;  %v3961_v63 = vpop.f32.mrb[42].mxu0  ;;  %v2925_v2 = vpop.f32.mrb[106].mxu1  ;;  %3191 = vrcp.f32 %v2357_v52  ;;  %v2358_v42 = vadd.f32 1.0, %v3186_v46 }
 0x471   : > { %v3965_v6 = vadd.f32 %v2925_v2, %v2193_v58  ;;  %v2062_v21 = vpop.f32.mrb[43].mxu0  ;;  %v2281_v51 = vpop.f32.mrb[107].mxu1  ;;  %v2663_v9 = vmul.f32 -1.442695, %v2941_v47 }
 0x472   : > { %v2943_v48 = vadd.f32 %v2062_v21, %v3910_v62  ;;  %v3968_v19 = vadd.f32 %v2281_v51, %v2185_v10  ;;  %3193 = vrcp.f32 %v2358_v42  ;;  %v2936_v51 = vadd.f32 %v3931_v25, %v3975_v49 }
 0x473   : > { %3195 = vpow2.f32 %v2663_v9 }
 0x474   : > { %v2664_v15 = vmul.f32 -1.442695, %v2943_v48 }
 0x475   : > { %v3188_v23 = vpop.eup %3187  ;;  %v3977_v54 = vpop.f32.mrb[44].mxu0 }
 0x476   : > { %3197 = vpow2.f32 %v2664_v15  ;;  %v2928_v16 = vpop.f32.mrb[108].mxu1  ;;  %v2359_v26 = vadd.f32 1.0, %v3188_v23  ;;  %v2068_v29 = vpop.f32.mrb[45].mxu0 }
 0x477   : > { %v3981_v28 = vadd.f32 %v2928_v16, %v2206_v18  ;;  %v2294_v31 = vpop.f32.mrb[109].mxu1  ;;  %v3190_v1 = vpop.eup %3189  ;;  %v2945_v8 = vadd.f32 %v2068_v29, %v3910_v62  ;;  %v2938_v18 = vadd.f32 %v3940_v13, %v3975_v49 }
 0x478   : > { %v3986_v53 = vadd.f32 %v2294_v31, %v2198_v24  ;;  %v3988_v57 = vpop.f32.mrb[46].mxu0  ;;  %v2929_v30 = vpop.f32.mrb[110].mxu1  ;;  %3199 = vrcp.f32 %v2359_v26  ;;  %v2360_v50 = vadd.f32 1.0, %v3190_v1 }
 0x479   : > { %v3992_v35 = vadd.f32 %v2929_v30, %v2209_v55  ;;  %v2072_v43 = vpop.f32.mrb[47].mxu0  ;;  %v2297_v61 = vpop.f32.mrb[111].mxu1  ;;  %v2665_v14 = vmul.f32 -1.442695, %v2945_v8 }
 0x47a   : > { %v2947_v17 = vadd.f32 %v2072_v43, %v3910_v62  ;;  %v3997_v12 = vadd.f32 %v2297_v61, %v2201_v41  ;;  %v3192_v45 = vpop.eup %3191  ;;  %3201 = vrcp.f32 %v2360_v50  ;;  %v2940_v61 = vadd.f32 %v3950_v27, %v3975_v49 }
 0x47b   : > { %v2405_v20 = vmul.f32 %v3192_v45, %v2932_v60  ;;  %3203 = vpow2.f32 %v2665_v14  ;;  %v2942_v45 = vadd.f32 %v3961_v63, %v3975_v49 }
 0x47c   : > { %v2666_v59 = vmul.f32 -1.442695, %v2947_v17  ;;  %v3194_v32 = vpop.eup %3193 }
 0x47d   : > { %v3196_v34 = vpop.eup %3195  ;;  %v2421_v52 = vadd.f32 %v2405_v20, %v3920_v7  ;;  %v2406_v40 = vmul.f32 %v3194_v32, %v2934_v38  ;;  %v4002_v0 = vpop.f32.mrb[48].mxu0 }
 0x47e   : > { %3205 = vpow2.f32 %v2666_v59  ;;  %v2361_v11 = vadd.f32 1.0, %v3196_v34  ;;  %v2078_v58 = vpop.f32.mrb[49].mxu0 }
 0x47f   : > { %v2437_v46 = vmax.f32 %v2421_v52, 0.0  ;;  %v2422_v47 = vadd.f32 %v2406_v40, %v3928_v5  ;;  %v2949_v7 = vadd.f32 %v2078_v58, %v3910_v62  ;;  %v4013_v2 = vpop.f32.mrb[50].mxu0 }
 0x480   : > { %v3198_v39 = vpop.eup %3197  ;;  %3207 = vrcp.f32 %v2361_v11  ;;  %v2082_v42 = vpop.f32.mrb[51].mxu0 }
 0x481   : > { %v2362_v10 = vadd.f32 1.0, %v3198_v39  ;;  %2453 = vst.msk [vmem:[%s4009_s18] sm:$0xff] %vm397_vm2, %v2437_v46  ;;  %v2438_v21 = vmax.f32 %v2422_v47, 0.0  ;;  %v2667_v9 = vmul.f32 -1.442695, %v2949_v7  ;;  %v2951_v48 = vadd.f32 %v2082_v42, %v3910_v62 }
 0x482   : > { %v3200_v15 = vpop.eup %3199 }
 0x483   : > { %3209 = vrcp.f32 %v2362_v10  ;;  %2454 = vst.msk [vmem:[%s4009_s18 + $0x8] sm:$0xff] %vm397_vm2, %v2438_v21  ;;  %v2407_v5 = vmul.f32 %v3200_v15, %v2936_v51  ;;  %v2668_v23 = vmul.f32 -1.442695, %v2951_v48  ;;  %v2944_v10 = vadd.f32 %v3977_v54, %v3975_v49 }
 0x484   : > { %3211 = vpow2.f32 %v2667_v9  ;;  %v3202_v16 = vpop.eup %3201  ;;  %v2946_v9 = vadd.f32 %v3988_v57, %v3975_v49 }
 0x485   : > { %v3204_v24 = vpop.eup %3203  ;;  %v2423_v26 = vadd.f32 %v2407_v5, %v3916_v3  ;;  %v2408_v29 = vmul.f32 %v3202_v16, %v2938_v18  ;;  %3213 = vpow2.f32 %v2668_v23  ;;  %v4025_v25 = vpop.f32.mrb[52].mxu0 }
 0x486   : > { %v2363_v31 = vadd.f32 1.0, %v3204_v24  ;;  %v2088_v55 = vpop.f32.mrb[53].mxu0 }
 0x487   : > { %v2439_v8 = vmax.f32 %v2423_v26, 0.0  ;;  %v2424_v30 = vadd.f32 %v2408_v29, %v3925_v56  ;;  %v2953_v13 = vadd.f32 %v2088_v55, %v3910_v62  ;;  %v4029_v41 = vpop.f32.mrb[54].mxu0 }
 0x488   : > { %v3206_v1 = vpop.eup %3205  ;;  %3215 = vrcp.f32 %v2363_v31  ;;  %v2092_v43 = vpop.f32.mrb[55].mxu0 }
 0x489   : > { %v2364_v50 = vadd.f32 1.0, %v3206_v1  ;;  %2455 = vst.msk [vmem:[%s4009_s18 + $0x10] sm:$0xff] %vm397_vm2, %v2439_v8  ;;  %v2440_v3 = vmax.f32 %v2424_v30, 0.0  ;;  %v2669_v60 = vmul.f32 -1.442695, %v2953_v13  ;;  %v2955_v14 = vadd.f32 %v2092_v43, %v3910_v62 }
 0x48a   : > { %v3208_v17 = vpop.eup %3207  ;;  %v2948_v30 = vadd.f32 %v4002_v0, %v3975_v49 }
 0x48b   : > { %3217 = vrcp.f32 %v2364_v50  ;;  %2456 = vst.msk [vmem:[%s4009_s18 + $0x18] sm:$0xff] %vm397_vm2, %v2440_v3  ;;  %v2409_v56 = vmul.f32 %v3208_v17, %v2940_v61  ;;  %v2670_v20 = vmul.f32 -1.442695, %v2955_v14  ;;  %v2950_v3 = vadd.f32 %v4013_v2, %v3975_v49 }
 0x48c   : > { %3219 = vpow2.f32 %v2669_v60  ;;  %v2952_v2 = vadd.f32 %v4025_v25, %v3975_v49 }
 0x48d   : > { %v3210_v38 = vpop.eup %3209  ;;  %v2425_v32 = vadd.f32 %v2409_v56, %v3938_v37  ;;  %3221 = vpow2.f32 %v2670_v20  ;;  %v4041_v27 = vpop.f32.mrb[56].mxu0 }
 0x48e   : > { %v3212_v59 = vpop.eup %3211  ;;  %v2410_v34 = vmul.f32 %v3210_v38, %v2942_v45  ;;  %v2098_v40 = vpop.f32.mrb[57].mxu0 }
 0x48f   : > { %v2365_v52 = vadd.f32 1.0, %v3212_v59  ;;  %v3214_v11 = vpop.eup %3213  ;;  %v2441_v58 = vmax.f32 %v2425_v32, 0.0  ;;  %v2957_v63 = vadd.f32 %v2098_v40, %v3910_v62  ;;  %v4045_v46 = vpop.f32.mrb[58].mxu0 }
 0x490   : > { %v2426_v39 = vadd.f32 %v2410_v34, %v3947_v44  ;;  %v2366_v47 = vadd.f32 1.0, %v3214_v11  ;;  %v2102_v7 = vpop.f32.mrb[59].mxu0  ;;  %v2954_v34 = vadd.f32 %v4029_v41, %v3975_v49  ;;  %v2956_v41 = vadd.f32 %v4041_v27, %v3975_v49 }
 0x491   : > { %3223 = vrcp.f32 %v2365_v52  ;;  %2457 = vst.msk [vmem:[%s4009_s18 + $0x20] sm:$0xff] %vm397_vm2, %v2441_v58  ;;  %v2671_v42 = vmul.f32 -1.442695, %v2957_v63  ;;  %v2959_v21 = vadd.f32 %v2102_v7, %v3910_v62 }
 0x492   : > { %v2442_v37 = vmax.f32 %v2426_v39, 0.0  ;;  %v3216_v51 = vpop.eup %3215  ;;  %3225 = vrcp.f32 %v2366_v47 }
 0x493   : > { %v2411_v44 = vmul.f32 %v3216_v51, %v2944_v10  ;;  %3227 = vpow2.f32 %v2671_v42  ;;  %v2672_v48 = vmul.f32 -1.442695, %v2959_v21  ;;  %v2958_v10 = vadd.f32 %v4045_v46, %v3975_v49 }
 0x494   : > { %2458 = vst.msk [vmem:[%s4009_s18 + $0x28] sm:$0xff] %vm397_vm2, %v2442_v37 }
 0x495   : > { %v3218_v15 = vpop.eup %3217  ;;  %v2427_v18 = vadd.f32 %v2411_v44, %v3934_v22  ;;  %3229 = vpow2.f32 %v2672_v48  ;;  %v4057_v54 = vpop.f32.mrb[60].mxu0 }
 0x496   : > { %v3220_v5 = vpop.eup %3219  ;;  %v2412_v23 = vmul.f32 %v3218_v15, %v2946_v9  ;;  %v2108_v24 = vpop.f32.mrb[61].mxu0  ;;  %v2960_v9 = vadd.f32 %v4057_v54, %v3975_v49 }
 0x497   : > { %v2367_v16 = vadd.f32 1.0, %v3220_v5  ;;  %v3222_v26 = vpop.eup %3221  ;;  %v2443_v29 = vmax.f32 %v2427_v18, 0.0  ;;  %v2961_v57 = vadd.f32 %v2108_v24, %v3910_v62  ;;  %v4061_v55 = vpop.f32.mrb[62].mxu0 }
 0x498   : > { %v2428_v31 = vadd.f32 %v2412_v23, %v3944_v33  ;;  %v2368_v1 = vadd.f32 1.0, %v3222_v26  ;;  %v2112_v8 = vpop.f32.mrb[63].mxu0  ;;  %v2962_v46 = vadd.f32 %v4061_v55, %v3975_v49 }
 0x499   : > { %3231 = vrcp.f32 %v2367_v16  ;;  %2459 = vst.msk [vmem:[%s4009_s18 + $0x30] sm:$0xff] %vm397_vm2, %v2443_v29  ;;  %v2673_v13 = vmul.f32 -1.442695, %v2961_v57  ;;  %v2963_v50 = vadd.f32 %v2112_v8, %v3910_v62 }
 0x49a   : > { %v2444_v22 = vmax.f32 %v2428_v31, 0.0  ;;  %3233 = vrcp.f32 %v2368_v1 }
 0x49b   : > { %v3224_v43 = vpop.eup %3223  ;;  %3235 = vpow2.f32 %v2673_v13  ;;  %v2674_v61 = vmul.f32 -1.442695, %v2963_v50 }
 0x49c   : > { %2460 = vst.msk [vmem:[%s4009_s18 + $0x38] sm:$0xff] %vm397_vm2, %v2444_v22  ;;  %v2413_v33 = vmul.f32 %v3224_v43, %v2948_v30  ;;  %v3226_v60 = vpop.eup %3225 }
 0x49d   : > { %v3228_v14 = vpop.eup %3227  ;;  %v2414_v0 = vmul.f32 %v3226_v60, %v2950_v3  ;;  %3237 = vpow2.f32 %v2674_v61 }
 0x49e   : > { %v2429_v17 = vadd.f32 %v2413_v33, %v3959_v36  ;;  %v2369_v56 = vadd.f32 1.0, %v3228_v14 }
 0x49f   : > { %v3230_v62 = vpop.eup %3229  ;;  %v2430_v20 = vadd.f32 %v2414_v0, %v3968_v19 }
 0x4a0   : > { %v2445_v45 = vmax.f32 %v2429_v17, 0.0  ;;  %3239 = vrcp.f32 %v2369_v56  ;;  %v2370_v38 = vadd.f32 1.0, %v3230_v62 }
 0x4a1   : > { %v2446_v59 = vmax.f32 %v2430_v20, 0.0 }
 0x4a2   : > { %2461 = vst.msk [vmem:[%s4009_s18 + $0x40] sm:$0xff] %vm397_vm2, %v2445_v45  ;;  %3241 = vrcp.f32 %v2370_v38 }
 0x4a3   : > { %v3232_v32 = vpop.eup %3231  ;;  %2462 = vst.msk [vmem:[%s4009_s18 + $0x48] sm:$0xff] %vm397_vm2, %v2446_v59 }
 0x4a4   : > { %v2415_v36 = vmul.f32 %v3232_v32, %v2952_v2  ;;  %v3234_v52 = vpop.eup %3233 }
 0x4a5   : > { %v3236_v19 = vpop.eup %3235  ;;  %v2416_v11 = vmul.f32 %v3234_v52, %v2954_v34 }
 0x4a6   : > { %v2431_v40 = vadd.f32 %v2415_v36, %v3954_v4  ;;  %v2371_v58 = vadd.f32 1.0, %v3236_v19 }
 0x4a7   : > { %v3238_v39 = vpop.eup %3237  ;;  %v2432_v25 = vadd.f32 %v2416_v11, %v3965_v6 }
 0x4a8   : > { %v2447_v63 = vmax.f32 %v2431_v40, 0.0  ;;  %3243 = vrcp.f32 %v2371_v58  ;;  %v2372_v47 = vadd.f32 1.0, %v3238_v39 }
 0x4a9   : > { %v2448_v7 = vmax.f32 %v2432_v25, 0.0 }
 0x4aa   : > { %2463 = vst.msk [vmem:[%s4009_s18 + $0x50] sm:$0xff] %vm397_vm2, %v2447_v63  ;;  %v3240_v37 = vpop.eup %3239  ;;  %3245 = vrcp.f32 %v2372_v47 }
 0x4ab   : > { %2464 = vst.msk [vmem:[%s4009_s18 + $0x58] sm:$0xff] %vm397_vm2, %v2448_v7  ;;  %v2417_v4 = vmul.f32 %v3240_v37, %v2956_v41 }
 0x4ac   : > { %v3242_v42 = vpop.eup %3241 }
 0x4ad   : > { %v2433_v6 = vadd.f32 %v2417_v4, %v3986_v53  ;;  %v2418_v21 = vmul.f32 %v3242_v42, %v2958_v10 }
 0x4af   : > { %v2449_v51 = vmax.f32 %v2433_v6, 0.0  ;;  %v2434_v44 = vadd.f32 %v2418_v21, %v3997_v12 }
 0x4b1   : > { %2465 = vst.msk [vmem:[%s4009_s18 + $0x60] sm:$0xff] %vm397_vm2, %v2449_v51  ;;  %v2450_v27 = vmax.f32 %v2434_v44, 0.0 }
 0x4b2   : > { %v3244_v48 = vpop.eup %3243 }
 0x4b3   : > { %2466 = vst.msk [vmem:[%s4009_s18 + $0x68] sm:$0xff] %vm397_vm2, %v2450_v27  ;;  %v2419_v15 = vmul.f32 %v3244_v48, %v2960_v9 }
 0x4b4   : > { %v3246_v53 = vpop.eup %3245 }
 0x4b5   : > { %v2435_v5 = vadd.f32 %v2419_v15, %v3981_v28  ;;  %v2420_v18 = vmul.f32 %v3246_v53, %v2962_v46 }
 0x4b7   : > { %v2451_v23 = vmax.f32 %v2435_v5, 0.0  ;;  %v2436_v12 = vadd.f32 %v2420_v18, %v3992_v35 }
 0x4b9   : > { %2467 = vst.msk [vmem:[%s4009_s18 + $0x70] sm:$0xff] %vm397_vm2, %v2451_v23  ;;  %v2452_v16 = vmax.f32 %v2436_v12, 0.0 }
 0x4bb   : > { %2468 = vst.msk [vmem:[%s4009_s18 + $0x78] sm:$0xff] %vm397_vm2, %v2452_v16 }
 0x4bc PF: > { %s18_s27 = sadd.s32 1, %s3253_s27  }
 0x4bd   : > { %p15_p4 = scmp.ge.s32.totalorder %s18_s27, 4  }
 0x4bf   :  { %17 = sbr.rel (!%p15_p4) target bundleno = 1 (0x1), region = 82 }

</bundles_post_ra>
